<compile_context>
chip_gen: v6e
topology: v6e:2x2x1
jax: 0.10.0
libtpu: 0.0.40
codegen_flags: <defaults>
</compile_context>

<pallas_src>
import math

import jax
import jax.numpy as jnp
from jax.experimental import pallas as pl
from jax.experimental.pallas import tpu as pltpu

# ---- model hyper-parameters (small, consistent with the module's __init__) ----
VOCAB = 64
D_MODEL = 32
NUM_HEADS = 4
HEAD_SIZE = 8            # num_heads * head_size == d_model
NUM_LAYERS = 2
CONTEXT = 8
FF_HIDDEN = 4 * D_MODEL
EPS = 1e-5
VOCAB_PAD = 128          # lane-dense padded output width (>= VOCAB, multiple of 128)

QKV_W = 3 * NUM_HEADS * HEAD_SIZE   # 96
K_OFF = NUM_HEADS * HEAD_SIZE       # 32
V_OFF = 2 * NUM_HEADS * HEAD_SIZE   # 64


def _layernorm(z, g, b):
    mu = jnp.mean(z, axis=-1, keepdims=True)
    var = jnp.mean((z - mu) ** 2, axis=-1, keepdims=True)
    return (z - mu) * jax.lax.rsqrt(var + EPS) * g + b


# --------------------------- fused Pallas kernel ------------------------------

def fwd_kernel(x_ref, pe_ref,
               wqkv_ref, bqkv_ref, wo_ref,
               w1_ref, b1_ref, w2_ref,
               lnp_ref, lnf_ref,
               wout_ref, bout_ref,
               out_ref):
    """Decoder forward for one batch element (grid step).

    x_ref        : (T, D) f32        pe_ref : (T, D) f32
    wqkv_ref     : (L, D, 3*H*hs) bf16  (1/sqrt(hs) folded into Q cols)
    bqkv_ref     : (L, 1, 3*H*hs) f32   (Q cols pre-scaled)
    wo_ref       : (L, D, D) bf16
    w1_ref       : (L, D, 4D) bf16   b1_ref : (L, 1, 4D) f32
    w2_ref       : (L, 4D, D) bf16
    lnp_ref      : (L, 6, D) f32  rows = [ln1g, ln1b, ln2g, ln2b, bo, b2]
    lnf_ref      : (2, D) f32     rows = [final ln g, final ln b]
    wout_ref     : (D, VOCAB_PAD) bf16   bout_ref : (1, VOCAB_PAD) f32
    out_ref      : (T, VOCAB_PAD) f32
    """
    T = x_ref.shape[0]
    x = x_ref[...] + pe_ref[...]                           # (T, D) f32

    # Purely-causal additive mask bias (0 / -1e30), built once per grid step.
    row = jax.lax.broadcasted_iota(jnp.int32, (T, T), 0)
    col = jax.lax.broadcasted_iota(jnp.int32, (T, T), 1)
    mask_bias = jnp.where(col <= row, 0.0, -1e30).astype(jnp.float32)

    for l in range(NUM_LAYERS):                            # static, unrolled (L=2)
        lp = lnp_ref[l]                                    # (6, D) f32
        ln1g, ln1b = lp[0:1], lp[1:2]
        ln2g, ln2b = lp[2:3], lp[3:4]
        bo, b2 = lp[4:5], lp[5:6]

        wqkv_l = wqkv_ref[l]                               # (D, 96)  bf16
        wo_l = wo_ref[l]                                   # (D, D)   bf16
        w1_l = w1_ref[l]                                   # (D, 4D)  bf16
        w2_l = w2_ref[l]                                   # (4D, D)  bf16

        # ---- self-attention sub-layer (pre-LN) ----
        h = _layernorm(x, ln1g, ln1b)                      # f32 VPU math
        qkv = jnp.dot(h.astype(jnp.bfloat16), wqkv_l,
                      preferred_element_type=jnp.float32) + bqkv_ref[l]   # (T, 96) f32

        sa = jnp.zeros((T, D_MODEL), jnp.float32)
        for hh in range(NUM_HEADS):                        # static, unrolled (H=4)
            q = qkv[:, hh * HEAD_SIZE:(hh + 1) * HEAD_SIZE]
            k = qkv[:, K_OFF + hh * HEAD_SIZE:K_OFF + (hh + 1) * HEAD_SIZE]
            v = qkv[:, V_OFF + hh * HEAD_SIZE:V_OFF + (hh + 1) * HEAD_SIZE]
            # scale already folded into W_q / b_q; mask is an additive bias
            s = jnp.einsum('te,se->ts',
                           q.astype(jnp.bfloat16), k.astype(jnp.bfloat16),
                           preferred_element_type=jnp.float32) + mask_bias
            s = s - jnp.max(s, axis=-1, keepdims=True)     # f32 softmax stats
            e = jnp.exp(s)
            p = e * pl.reciprocal(jnp.sum(e, axis=-1, keepdims=True), approx=True)
            head = jnp.dot(p.astype(jnp.bfloat16), v.astype(jnp.bfloat16),
                           preferred_element_type=jnp.float32)           # (T, hs)
            # concat(heads) @ W_o  ==  sum_h head_h @ W_o[h*hs:(h+1)*hs, :]
            sa = sa + jnp.dot(head.astype(jnp.bfloat16),
                              wo_l[hh * HEAD_SIZE:(hh + 1) * HEAD_SIZE, :],
                              preferred_element_type=jnp.float32)
        x = x + sa + bo                                    # residual 1 (dropout no-op)

        # ---- feed-forward sub-layer (pre-LN) ----
        h2 = _layernorm(x, ln2g, ln2b)
        ff = jnp.maximum(
            jnp.dot(h2.astype(jnp.bfloat16), w1_l,
                    preferred_element_type=jnp.float32) + b1_ref[l], 0.0)
        ff = jnp.dot(ff.astype(jnp.bfloat16), w2_l,
                     preferred_element_type=jnp.float32) + b2
        x = x + ff                                         # residual 2 (dropout no-op)

    # ---- final LayerNorm + (padded) vocab projection ----
    lf = lnf_ref[...]                                      # (2, D)
    h = _layernorm(x, lf[0:1], lf[1:2])
    out_ref[...] = jnp.dot(h.astype(jnp.bfloat16), wout_ref[...],
                           preferred_element_type=jnp.float32) + bout_ref[...]


# --------------------------- parameters ---------------------------------------

def _sinusoidal_pe(max_len, d_model):
    pos = jnp.arange(max_len, dtype=jnp.float32)[:, None]
    div = jnp.exp(jnp.arange(0, d_model, 2, dtype=jnp.float32)
                  * (-math.log(10000.0) / d_model))
    pe = jnp.zeros((max_len, d_model), jnp.float32)
    pe = pe.at[:, 0::2].set(jnp.sin(pos * div))
    pe = pe.at[:, 1::2].set(jnp.cos(pos * div))
    return pe


def init_params(key):
    kit = iter(jax.random.split(key, 16))
    nrm = lambda shape, scale: scale * jax.random.normal(next(kit), shape, jnp.float32)
    L, D, FF = NUM_LAYERS, D_MODEL, FF_HIDDEN
    attn_scale = 1.0 / math.sqrt(HEAD_SIZE)

    # per-layer weights, stacked with a leading L axis; MXU operands stored in bf16
    wqkv = nrm((L, D, QKV_W), 1.0 / math.sqrt(D))          # [Wq heads | Wk heads | Wv heads]
    bqkv = nrm((L, 1, QKV_W), 0.01)
    # fold 1/sqrt(head_size) into the Q columns (weight AND bias)
    wqkv = wqkv.at[:, :, :K_OFF].multiply(attn_scale)
    bqkv = bqkv.at[:, :, :K_OFF].multiply(attn_scale)

    wo = nrm((L, D, D), 1.0 / math.sqrt(D))                # == vstack of per-head (hs, D)
    w1 = nrm((L, D, FF), 1.0 / math.sqrt(D))
    b1 = nrm((L, 1, FF), 0.01)
    w2 = nrm((L, FF, D), 1.0 / math.sqrt(FF))
    bo = nrm((L, 1, D), 0.01)
    b2 = nrm((L, 1, D), 0.01)
    # packed small params: rows = [ln1g, ln1b, ln2g, ln2b, bo, b2]
    lnp = jnp.concatenate([jnp.ones((L, 1, D), jnp.float32),
                           jnp.zeros((L, 1, D), jnp.float32),
                           jnp.ones((L, 1, D), jnp.float32),
                           jnp.zeros((L, 1, D), jnp.float32),
                           bo, b2], axis=1)                # (L, 6, D)
    lnf = jnp.concatenate([jnp.ones((1, D), jnp.float32),
                           jnp.zeros((1, D), jnp.float32)], axis=0)   # (2, D)

    # vocab projection, zero-padded to VOCAB_PAD lanes for a lane-dense store
    w_out = jnp.zeros((D, VOCAB_PAD), jnp.float32)
    w_out = w_out.at[:, :VOCAB].set(nrm((D, VOCAB), 1.0 / math.sqrt(D)))
    b_out = jnp.zeros((1, VOCAB_PAD), jnp.float32)
    b_out = b_out.at[:, :VOCAB].set(nrm((1, VOCAB), 0.01))

    return {
        'token_emb': nrm((VOCAB, D), 0.02),
        'pe': _sinusoidal_pe(CONTEXT, D),
        'wqkv': wqkv.astype(jnp.bfloat16), 'bqkv': bqkv,
        'wo': wo.astype(jnp.bfloat16),
        'w1': w1.astype(jnp.bfloat16), 'b1': b1,
        'w2': w2.astype(jnp.bfloat16),
        'lnp': lnp, 'lnf': lnf,
        'w_out': w_out.astype(jnp.bfloat16), 'b_out': b_out,
    }


# --------------------------- forward -------------------------------------------

@jax.jit
def transformer_forward(tokens, params):
    B, T = tokens.shape
    if T > CONTEXT:
        raise ValueError(f"sequence length {T} exceeds context size {CONTEXT}")
    # token embedding (gather): glue in plain JAX, fused by XLA
    x = jnp.take(params['token_emb'], tokens.reshape(-1), axis=0)     # (B*T, D)
    pe = params['pe'][:T]                                             # (T, D), no tiling

    D, L, FF = D_MODEL, NUM_LAYERS, FF_HIDDEN
    out = pl.pallas_call(
        fwd_kernel,
        out_shape=jax.ShapeDtypeStruct((B * T, VOCAB_PAD), jnp.float32),
        grid=(B,),
        in_specs=[
            pl.BlockSpec((T, D), lambda b: (b, 0)),            # x       (per-batch block)
            pl.BlockSpec((T, D), lambda b: (0, 0)),            # pe      (resident)
            pl.BlockSpec((L, D, QKV_W), lambda b: (0, 0, 0)),  # wqkv    (resident)
            pl.BlockSpec((L, 1, QKV_W), lambda b: (0, 0, 0)),  # bqkv
            pl.BlockSpec((L, D, D), lambda b: (0, 0, 0)),      # wo
            pl.BlockSpec((L, D, FF), lambda b: (0, 0, 0)),     # w1
            pl.BlockSpec((L, 1, FF), lambda b: (0, 0, 0)),     # b1
            pl.BlockSpec((L, FF, D), lambda b: (0, 0, 0)),     # w2
            pl.BlockSpec((L, 6, D), lambda b: (0, 0, 0)),      # lnp
            pl.BlockSpec((2, D), lambda b: (0, 0)),            # lnf
            pl.BlockSpec((D, VOCAB_PAD), lambda b: (0, 0)),    # w_out
            pl.BlockSpec((1, VOCAB_PAD), lambda b: (0, 0)),    # b_out
        ],
        out_specs=pl.BlockSpec((T, VOCAB_PAD), lambda b: (b, 0)),
        compiler_params=pltpu.CompilerParams(
            dimension_semantics=("parallel",)),                # v7x: shard batch over TCs
    )(x, pe,
      params['wqkv'], params['bqkv'], params['wo'],
      params['w1'], params['b1'], params['w2'],
      params['lnp'], params['lnf'],
      params['w_out'], params['b_out'])

    return out[:, :VOCAB].reshape(B, T, VOCAB)
    # TODO(synk): training loss branch (y is not None -> cross_entropy) and
    # autoregressive generate() with multinomial sampling are not implemented.


if __name__ == "__main__":
    key = jax.random.PRNGKey(0)
    pkey, tkey = jax.random.split(key)
    params = init_params(pkey)
    tokens = jax.random.randint(tkey, (2, CONTEXT), 0, VOCAB, dtype=jnp.int32)

    logits = transformer_forward(tokens, params)
    jax.block_until_ready(logits)

    assert logits.shape == (2, CONTEXT, VOCAB)
    assert logits.dtype == jnp.float32
    assert bool(jnp.all(jnp.isfinite(logits)))
    print("KERNEL_OK")
</pallas_src>

<mosaic_0001>
module attributes {stable_mosaic.version = 11 : i64} {
  func.func @fwd_kernel(%arg0: i32, %arg1: memref<8x32xf32, #tpu.memory_space<vmem>>, %arg2: memref<8x32xf32, #tpu.memory_space<vmem>>, %arg3: memref<2x32x96xbf16, #tpu.memory_space<vmem>>, %arg4: memref<2x1x96xf32, #tpu.memory_space<vmem>>, %arg5: memref<2x32x32xbf16, #tpu.memory_space<vmem>>, %arg6: memref<2x32x128xbf16, #tpu.memory_space<vmem>>, %arg7: memref<2x1x128xf32, #tpu.memory_space<vmem>>, %arg8: memref<2x128x32xbf16, #tpu.memory_space<vmem>>, %arg9: memref<2x6x32xf32, #tpu.memory_space<vmem>>, %arg10: memref<2x32xf32, #tpu.memory_space<vmem>>, %arg11: memref<32x128xbf16, #tpu.memory_space<vmem>>, %arg12: memref<1x128xf32, #tpu.memory_space<vmem>>, %arg13: memref<8x128xf32, #tpu.memory_space<vmem>>) attributes {dimension_semantics = [#tpu.dimension_semantics<parallel>], iteration_bounds = array<i64: 2>, scalar_prefetch = 0 : i64, scratch_operands = 0 : i64, tpu.core_type = #tpu.core_type<tc>, window_params = [{transform_indices = @transform_0, window_bounds = array<i64: 8, 32>}, {pipeline_mode = #tpu.pipeline_mode<synchronous>, transform_indices = @transform_1, window_bounds = array<i64: 8, 32>}, {pipeline_mode = #tpu.pipeline_mode<synchronous>, transform_indices = @transform_2, window_bounds = array<i64: 2, 32, 96>}, {pipeline_mode = #tpu.pipeline_mode<synchronous>, transform_indices = @transform_3, window_bounds = array<i64: 2, 1, 96>}, {pipeline_mode = #tpu.pipeline_mode<synchronous>, transform_indices = @transform_4, window_bounds = array<i64: 2, 32, 32>}, {pipeline_mode = #tpu.pipeline_mode<synchronous>, transform_indices = @transform_5, window_bounds = array<i64: 2, 32, 128>}, {pipeline_mode = #tpu.pipeline_mode<synchronous>, transform_indices = @transform_6, window_bounds = array<i64: 2, 1, 128>}, {pipeline_mode = #tpu.pipeline_mode<synchronous>, transform_indices = @transform_7, window_bounds = array<i64: 2, 128, 32>}, {pipeline_mode = #tpu.pipeline_mode<synchronous>, transform_indices = @transform_8, window_bounds = array<i64: 2, 6, 32>}, {pipeline_mode = #tpu.pipeline_mode<synchronous>, transform_indices = @transform_9, window_bounds = array<i64: 2, 32>}, {pipeline_mode = #tpu.pipeline_mode<synchronous>, transform_indices = @transform_10, window_bounds = array<i64: 32, 128>}, {pipeline_mode = #tpu.pipeline_mode<synchronous>, transform_indices = @transform_11, window_bounds = array<i64: 1, 128>}, {transform_indices = @transform_12, window_bounds = array<i64: 8, 128>}]} {
    %c0 = arith.constant 0 : index
    %c0_0 = arith.constant 0 : index
    %0 = vector.load %arg1[%c0, %c0_0] : memref<8x32xf32, #tpu.memory_space<vmem>>, vector<8x32xf32>
    %c0_1 = arith.constant 0 : index
    %c0_2 = arith.constant 0 : index
    %1 = vector.load %arg2[%c0_1, %c0_2] : memref<8x32xf32, #tpu.memory_space<vmem>>, vector<8x32xf32>
    %2 = arith.addf %0, %1 : vector<8x32xf32>
    %3 = tpu.iota {dimensions = array<i32: 0>} : vector<8x8xi32>
    %4 = tpu.iota {dimensions = array<i32: 1>} : vector<8x8xi32>
    %5 = arith.cmpi sle, %4, %3 : vector<8x8xi32>
    %cst = arith.constant 0.000000e+00 : f32
    %cst_3 = arith.constant -1.000000e+30 : f32
    %6 = vector.broadcast %cst : f32 to vector<8x8xf32>
    %7 = vector.broadcast %cst_3 : f32 to vector<8x8xf32>
    %8 = arith.select %5, %6, %7 : vector<8x8xi1>, vector<8x8xf32>
    %c0_4 = arith.constant 0 : index
    %c0_5 = arith.constant 0 : index
    %c0_6 = arith.constant 0 : index
    %9 = vector.load %arg9[%c0_4, %c0_5, %c0_6] : memref<2x6x32xf32, #tpu.memory_space<vmem>>, vector<1x6x32xf32>
    %10 = vector.shape_cast %9 : vector<1x6x32xf32> to vector<6x32xf32>
    %11 = vector.extract_strided_slice %10 {offsets = [0, 0], sizes = [1, 32], strides = [1, 1]} : vector<6x32xf32> to vector<1x32xf32>
    %12 = vector.extract_strided_slice %10 {offsets = [1, 0], sizes = [1, 32], strides = [1, 1]} : vector<6x32xf32> to vector<1x32xf32>
    %13 = vector.extract_strided_slice %10 {offsets = [2, 0], sizes = [1, 32], strides = [1, 1]} : vector<6x32xf32> to vector<1x32xf32>
    %14 = vector.extract_strided_slice %10 {offsets = [3, 0], sizes = [1, 32], strides = [1, 1]} : vector<6x32xf32> to vector<1x32xf32>
    %15 = vector.extract_strided_slice %10 {offsets = [4, 0], sizes = [1, 32], strides = [1, 1]} : vector<6x32xf32> to vector<1x32xf32>
    %16 = vector.extract_strided_slice %10 {offsets = [5, 0], sizes = [1, 32], strides = [1, 1]} : vector<6x32xf32> to vector<1x32xf32>
    %c0_7 = arith.constant 0 : index
    %c0_8 = arith.constant 0 : index
    %c0_9 = arith.constant 0 : index
    %17 = vector.load %arg3[%c0_7, %c0_8, %c0_9] : memref<2x32x96xbf16, #tpu.memory_space<vmem>>, vector<1x32x96xbf16>
    %18 = vector.shape_cast %17 : vector<1x32x96xbf16> to vector<32x96xbf16>
    %c0_10 = arith.constant 0 : index
    %c0_11 = arith.constant 0 : index
    %c0_12 = arith.constant 0 : index
    %19 = vector.load %arg5[%c0_10, %c0_11, %c0_12] : memref<2x32x32xbf16, #tpu.memory_space<vmem>>, vector<1x32x32xbf16>
    %20 = vector.shape_cast %19 : vector<1x32x32xbf16> to vector<32x32xbf16>
    %c0_13 = arith.constant 0 : index
    %c0_14 = arith.constant 0 : index
    %c0_15 = arith.constant 0 : index
    %21 = vector.load %arg6[%c0_13, %c0_14, %c0_15] : memref<2x32x128xbf16, #tpu.memory_space<vmem>>, vector<1x32x128xbf16>
    %22 = vector.shape_cast %21 : vector<1x32x128xbf16> to vector<32x128xbf16>
    %c0_16 = arith.constant 0 : index
    %c0_17 = arith.constant 0 : index
    %c0_18 = arith.constant 0 : index
    %23 = vector.load %arg8[%c0_16, %c0_17, %c0_18] : memref<2x128x32xbf16, #tpu.memory_space<vmem>>, vector<1x128x32xbf16>
    %24 = vector.shape_cast %23 : vector<1x128x32xbf16> to vector<128x32xbf16>
    %cst_19 = arith.constant dense<0.000000e+00> : vector<8xf32>
    %25 = vector.multi_reduction <add>, %2, %cst_19 [1] : vector<8x32xf32> to vector<8xf32>
    %26 = vector.shape_cast %25 : vector<8xf32> to vector<8x1xf32>
    %cst_20 = arith.constant 3.200000e+01 : f32
    %27 = vector.broadcast %cst_20 : f32 to vector<8x1xf32>
    %28 = arith.divf %26, %27 : vector<8x1xf32>
    %29 = vector.broadcast %28 : vector<8x1xf32> to vector<8x32xf32>
    %30 = arith.subf %2, %29 : vector<8x32xf32>
    %31 = arith.mulf %30, %30 : vector<8x32xf32>
    %cst_21 = arith.constant dense<0.000000e+00> : vector<8xf32>
    %32 = vector.multi_reduction <add>, %31, %cst_21 [1] : vector<8x32xf32> to vector<8xf32>
    %33 = vector.shape_cast %32 : vector<8xf32> to vector<8x1xf32>
    %cst_22 = arith.constant 3.200000e+01 : f32
    %34 = vector.broadcast %cst_22 : f32 to vector<8x1xf32>
    %35 = arith.divf %33, %34 : vector<8x1xf32>
    %36 = vector.broadcast %28 : vector<8x1xf32> to vector<8x32xf32>
    %37 = arith.subf %2, %36 : vector<8x32xf32>
    %cst_23 = arith.constant 9.99999974E-6 : f32
    %38 = vector.broadcast %cst_23 : f32 to vector<8x1xf32>
    %39 = arith.addf %35, %38 : vector<8x1xf32>
    %40 = math.rsqrt %39 : vector<8x1xf32>
    %41 = vector.broadcast %40 : vector<8x1xf32> to vector<8x32xf32>
    %42 = arith.mulf %37, %41 : vector<8x32xf32>
    %43 = vector.broadcast %11 : vector<1x32xf32> to vector<8x32xf32>
    %44 = arith.mulf %42, %43 : vector<8x32xf32>
    %45 = vector.broadcast %12 : vector<1x32xf32> to vector<8x32xf32>
    %46 = arith.addf %44, %45 : vector<8x32xf32>
    %47 = arith.truncf %46 : vector<8x32xf32> to vector<8x32xbf16>
    %cst_24 = arith.constant dense<0.000000e+00> : vector<8x96xf32>
    %48 = tpu.matmul %47, %18, %cst_24 {dimension_numbers = #tpu.dot_dimension_numbers<[1], [0], [0], [1], [0, 0, 1, 1], [], []>} : vector<8x32xbf16>, vector<32x96xbf16>, vector<8x96xf32> -> vector<8x96xf32>
    %c0_25 = arith.constant 0 : index
    %c0_26 = arith.constant 0 : index
    %c0_27 = arith.constant 0 : index
    %49 = vector.load %arg4[%c0_25, %c0_26, %c0_27] : memref<2x1x96xf32, #tpu.memory_space<vmem>>, vector<1x1x96xf32>
    %50 = vector.shape_cast %49 : vector<1x1x96xf32> to vector<1x96xf32>
    %51 = vector.broadcast %50 : vector<1x96xf32> to vector<8x96xf32>
    %52 = arith.addf %48, %51 : vector<8x96xf32>
    %cst_28 = arith.constant 0.000000e+00 : f32
    %53 = vector.broadcast %cst_28 : f32 to vector<8x32xf32>
    %54 = vector.extract_strided_slice %52 {offsets = [0, 0], sizes = [8, 8], strides = [1, 1]} : vector<8x96xf32> to vector<8x8xf32>
    %55 = vector.extract_strided_slice %52 {offsets = [0, 32], sizes = [8, 8], strides = [1, 1]} : vector<8x96xf32> to vector<8x8xf32>
    %56 = vector.extract_strided_slice %52 {offsets = [0, 64], sizes = [8, 8], strides = [1, 1]} : vector<8x96xf32> to vector<8x8xf32>
    %57 = arith.truncf %54 : vector<8x8xf32> to vector<8x8xbf16>
    %58 = arith.truncf %55 : vector<8x8xf32> to vector<8x8xbf16>
    "tpu.trace_start"() <{level = 10 : i32, message = "te,se->ts"}> : () -> ()
    %cst_29 = arith.constant dense<0.000000e+00> : vector<8x8xf32>
    %59 = tpu.matmul %57, %58, %cst_29 {dimension_numbers = #tpu.dot_dimension_numbers<[1], [1], [0], [0], [0, 0, 1, 0], [], []>} : vector<8x8xbf16>, vector<8x8xbf16>, vector<8x8xf32> -> vector<8x8xf32>
    "tpu.trace_stop"() : () -> ()
    %60 = arith.addf %59, %8 : vector<8x8xf32>
    %cst_30 = arith.constant dense<0xFF800000> : vector<8xf32>
    %61 = vector.multi_reduction <maximumf>, %60, %cst_30 [1] : vector<8x8xf32> to vector<8xf32>
    %62 = vector.shape_cast %61 : vector<8xf32> to vector<8x1xf32>
    %63 = vector.broadcast %62 : vector<8x1xf32> to vector<8x8xf32>
    %64 = arith.subf %60, %63 : vector<8x8xf32>
    %65 = math.exp %64 : vector<8x8xf32>
    %cst_31 = arith.constant dense<0.000000e+00> : vector<8xf32>
    %66 = vector.multi_reduction <add>, %65, %cst_31 [1] : vector<8x8xf32> to vector<8xf32>
    %67 = vector.shape_cast %66 : vector<8xf32> to vector<8x1xf32>
    %68 = tpu.reciprocal %67 {approx = true} : vector<8x1xf32> -> vector<8x1xf32>
    %69 = vector.broadcast %68 : vector<8x1xf32> to vector<8x8xf32>
    %70 = arith.mulf %65, %69 : vector<8x8xf32>
    %71 = arith.truncf %70 : vector<8x8xf32> to vector<8x8xbf16>
    %72 = arith.truncf %56 : vector<8x8xf32> to vector<8x8xbf16>
    %cst_32 = arith.constant dense<0.000000e+00> : vector<8x8xf32>
    %73 = tpu.matmul %71, %72, %cst_32 {dimension_numbers = #tpu.dot_dimension_numbers<[1], [0], [0], [1], [0, 0, 1, 1], [], []>} : vector<8x8xbf16>, vector<8x8xbf16>, vector<8x8xf32> -> vector<8x8xf32>
    %74 = arith.truncf %73 : vector<8x8xf32> to vector<8x8xbf16>
    %75 = vector.extract_strided_slice %20 {offsets = [0, 0], sizes = [8, 32], strides = [1, 1]} : vector<32x32xbf16> to vector<8x32xbf16>
    %cst_33 = arith.constant dense<0.000000e+00> : vector<8x32xf32>
    %76 = tpu.matmul %74, %75, %cst_33 {dimension_numbers = #tpu.dot_dimension_numbers<[1], [0], [0], [1], [0, 0, 1, 1], [], []>} : vector<8x8xbf16>, vector<8x32xbf16>, vector<8x32xf32> -> vector<8x32xf32>
    %77 = arith.addf %53, %76 : vector<8x32xf32>
    %78 = vector.extract_strided_slice %52 {offsets = [0, 8], sizes = [8, 8], strides = [1, 1]} : vector<8x96xf32> to vector<8x8xf32>
    %79 = vector.extract_strided_slice %52 {offsets = [0, 40], sizes = [8, 8], strides = [1, 1]} : vector<8x96xf32> to vector<8x8xf32>
    %80 = vector.extract_strided_slice %52 {offsets = [0, 72], sizes = [8, 8], strides = [1, 1]} : vector<8x96xf32> to vector<8x8xf32>
    %81 = arith.truncf %78 : vector<8x8xf32> to vector<8x8xbf16>
    %82 = arith.truncf %79 : vector<8x8xf32> to vector<8x8xbf16>
    "tpu.trace_start"() <{level = 10 : i32, message = "te,se->ts"}> : () -> ()
    %cst_34 = arith.constant dense<0.000000e+00> : vector<8x8xf32>
    %83 = tpu.matmul %81, %82, %cst_34 {dimension_numbers = #tpu.dot_dimension_numbers<[1], [1], [0], [0], [0, 0, 1, 0], [], []>} : vector<8x8xbf16>, vector<8x8xbf16>, vector<8x8xf32> -> vector<8x8xf32>
    "tpu.trace_stop"() : () -> ()
    %84 = arith.addf %83, %8 : vector<8x8xf32>
    %cst_35 = arith.constant dense<0xFF800000> : vector<8xf32>
    %85 = vector.multi_reduction <maximumf>, %84, %cst_35 [1] : vector<8x8xf32> to vector<8xf32>
    %86 = vector.shape_cast %85 : vector<8xf32> to vector<8x1xf32>
    %87 = vector.broadcast %86 : vector<8x1xf32> to vector<8x8xf32>
    %88 = arith.subf %84, %87 : vector<8x8xf32>
    %89 = math.exp %88 : vector<8x8xf32>
    %cst_36 = arith.constant dense<0.000000e+00> : vector<8xf32>
    %90 = vector.multi_reduction <add>, %89, %cst_36 [1] : vector<8x8xf32> to vector<8xf32>
    %91 = vector.shape_cast %90 : vector<8xf32> to vector<8x1xf32>
    %92 = tpu.reciprocal %91 {approx = true} : vector<8x1xf32> -> vector<8x1xf32>
    %93 = vector.broadcast %92 : vector<8x1xf32> to vector<8x8xf32>
    %94 = arith.mulf %89, %93 : vector<8x8xf32>
    %95 = arith.truncf %94 : vector<8x8xf32> to vector<8x8xbf16>
    %96 = arith.truncf %80 : vector<8x8xf32> to vector<8x8xbf16>
    %cst_37 = arith.constant dense<0.000000e+00> : vector<8x8xf32>
    %97 = tpu.matmul %95, %96, %cst_37 {dimension_numbers = #tpu.dot_dimension_numbers<[1], [0], [0], [1], [0, 0, 1, 1], [], []>} : vector<8x8xbf16>, vector<8x8xbf16>, vector<8x8xf32> -> vector<8x8xf32>
    %98 = arith.truncf %97 : vector<8x8xf32> to vector<8x8xbf16>
    %99 = vector.extract_strided_slice %20 {offsets = [8, 0], sizes = [8, 32], strides = [1, 1]} : vector<32x32xbf16> to vector<8x32xbf16>
    %cst_38 = arith.constant dense<0.000000e+00> : vector<8x32xf32>
    %100 = tpu.matmul %98, %99, %cst_38 {dimension_numbers = #tpu.dot_dimension_numbers<[1], [0], [0], [1], [0, 0, 1, 1], [], []>} : vector<8x8xbf16>, vector<8x32xbf16>, vector<8x32xf32> -> vector<8x32xf32>
    %101 = arith.addf %77, %100 : vector<8x32xf32>
    %102 = vector.extract_strided_slice %52 {offsets = [0, 16], sizes = [8, 8], strides = [1, 1]} : vector<8x96xf32> to vector<8x8xf32>
    %103 = vector.extract_strided_slice %52 {offsets = [0, 48], sizes = [8, 8], strides = [1, 1]} : vector<8x96xf32> to vector<8x8xf32>
    %104 = vector.extract_strided_slice %52 {offsets = [0, 80], sizes = [8, 8], strides = [1, 1]} : vector<8x96xf32> to vector<8x8xf32>
    %105 = arith.truncf %102 : vector<8x8xf32> to vector<8x8xbf16>
    %106 = arith.truncf %103 : vector<8x8xf32> to vector<8x8xbf16>
    "tpu.trace_start"() <{level = 10 : i32, message = "te,se->ts"}> : () -> ()
    %cst_39 = arith.constant dense<0.000000e+00> : vector<8x8xf32>
    %107 = tpu.matmul %105, %106, %cst_39 {dimension_numbers = #tpu.dot_dimension_numbers<[1], [1], [0], [0], [0, 0, 1, 0], [], []>} : vector<8x8xbf16>, vector<8x8xbf16>, vector<8x8xf32> -> vector<8x8xf32>
    "tpu.trace_stop"() : () -> ()
    %108 = arith.addf %107, %8 : vector<8x8xf32>
    %cst_40 = arith.constant dense<0xFF800000> : vector<8xf32>
    %109 = vector.multi_reduction <maximumf>, %108, %cst_40 [1] : vector<8x8xf32> to vector<8xf32>
    %110 = vector.shape_cast %109 : vector<8xf32> to vector<8x1xf32>
    %111 = vector.broadcast %110 : vector<8x1xf32> to vector<8x8xf32>
    %112 = arith.subf %108, %111 : vector<8x8xf32>
    %113 = math.exp %112 : vector<8x8xf32>
    %cst_41 = arith.constant dense<0.000000e+00> : vector<8xf32>
    %114 = vector.multi_reduction <add>, %113, %cst_41 [1] : vector<8x8xf32> to vector<8xf32>
    %115 = vector.shape_cast %114 : vector<8xf32> to vector<8x1xf32>
    %116 = tpu.reciprocal %115 {approx = true} : vector<8x1xf32> -> vector<8x1xf32>
    %117 = vector.broadcast %116 : vector<8x1xf32> to vector<8x8xf32>
    %118 = arith.mulf %113, %117 : vector<8x8xf32>
    %119 = arith.truncf %118 : vector<8x8xf32> to vector<8x8xbf16>
    %120 = arith.truncf %104 : vector<8x8xf32> to vector<8x8xbf16>
    %cst_42 = arith.constant dense<0.000000e+00> : vector<8x8xf32>
    %121 = tpu.matmul %119, %120, %cst_42 {dimension_numbers = #tpu.dot_dimension_numbers<[1], [0], [0], [1], [0, 0, 1, 1], [], []>} : vector<8x8xbf16>, vector<8x8xbf16>, vector<8x8xf32> -> vector<8x8xf32>
    %122 = arith.truncf %121 : vector<8x8xf32> to vector<8x8xbf16>
    %123 = vector.extract_strided_slice %20 {offsets = [16, 0], sizes = [8, 32], strides = [1, 1]} : vector<32x32xbf16> to vector<8x32xbf16>
    %cst_43 = arith.constant dense<0.000000e+00> : vector<8x32xf32>
    %124 = tpu.matmul %122, %123, %cst_43 {dimension_numbers = #tpu.dot_dimension_numbers<[1], [0], [0], [1], [0, 0, 1, 1], [], []>} : vector<8x8xbf16>, vector<8x32xbf16>, vector<8x32xf32> -> vector<8x32xf32>
    %125 = arith.addf %101, %124 : vector<8x32xf32>
    %126 = vector.extract_strided_slice %52 {offsets = [0, 24], sizes = [8, 8], strides = [1, 1]} : vector<8x96xf32> to vector<8x8xf32>
    %127 = vector.extract_strided_slice %52 {offsets = [0, 56], sizes = [8, 8], strides = [1, 1]} : vector<8x96xf32> to vector<8x8xf32>
    %128 = vector.extract_strided_slice %52 {offsets = [0, 88], sizes = [8, 8], strides = [1, 1]} : vector<8x96xf32> to vector<8x8xf32>
    %129 = arith.truncf %126 : vector<8x8xf32> to vector<8x8xbf16>
    %130 = arith.truncf %127 : vector<8x8xf32> to vector<8x8xbf16>
    "tpu.trace_start"() <{level = 10 : i32, message = "te,se->ts"}> : () -> ()
    %cst_44 = arith.constant dense<0.000000e+00> : vector<8x8xf32>
    %131 = tpu.matmul %129, %130, %cst_44 {dimension_numbers = #tpu.dot_dimension_numbers<[1], [1], [0], [0], [0, 0, 1, 0], [], []>} : vector<8x8xbf16>, vector<8x8xbf16>, vector<8x8xf32> -> vector<8x8xf32>
    "tpu.trace_stop"() : () -> ()
    %132 = arith.addf %131, %8 : vector<8x8xf32>
    %cst_45 = arith.constant dense<0xFF800000> : vector<8xf32>
    %133 = vector.multi_reduction <maximumf>, %132, %cst_45 [1] : vector<8x8xf32> to vector<8xf32>
    %134 = vector.shape_cast %133 : vector<8xf32> to vector<8x1xf32>
    %135 = vector.broadcast %134 : vector<8x1xf32> to vector<8x8xf32>
    %136 = arith.subf %132, %135 : vector<8x8xf32>
    %137 = math.exp %136 : vector<8x8xf32>
    %cst_46 = arith.constant dense<0.000000e+00> : vector<8xf32>
    %138 = vector.multi_reduction <add>, %137, %cst_46 [1] : vector<8x8xf32> to vector<8xf32>
    %139 = vector.shape_cast %138 : vector<8xf32> to vector<8x1xf32>
    %140 = tpu.reciprocal %139 {approx = true} : vector<8x1xf32> -> vector<8x1xf32>
    %141 = vector.broadcast %140 : vector<8x1xf32> to vector<8x8xf32>
    %142 = arith.mulf %137, %141 : vector<8x8xf32>
    %143 = arith.truncf %142 : vector<8x8xf32> to vector<8x8xbf16>
    %144 = arith.truncf %128 : vector<8x8xf32> to vector<8x8xbf16>
    %cst_47 = arith.constant dense<0.000000e+00> : vector<8x8xf32>
    %145 = tpu.matmul %143, %144, %cst_47 {dimension_numbers = #tpu.dot_dimension_numbers<[1], [0], [0], [1], [0, 0, 1, 1], [], []>} : vector<8x8xbf16>, vector<8x8xbf16>, vector<8x8xf32> -> vector<8x8xf32>
    %146 = arith.truncf %145 : vector<8x8xf32> to vector<8x8xbf16>
    %147 = vector.extract_strided_slice %20 {offsets = [24, 0], sizes = [8, 32], strides = [1, 1]} : vector<32x32xbf16> to vector<8x32xbf16>
    %cst_48 = arith.constant dense<0.000000e+00> : vector<8x32xf32>
    %148 = tpu.matmul %146, %147, %cst_48 {dimension_numbers = #tpu.dot_dimension_numbers<[1], [0], [0], [1], [0, 0, 1, 1], [], []>} : vector<8x8xbf16>, vector<8x32xbf16>, vector<8x32xf32> -> vector<8x32xf32>
    %149 = arith.addf %125, %148 : vector<8x32xf32>
    %150 = arith.addf %2, %149 : vector<8x32xf32>
    %151 = vector.broadcast %15 : vector<1x32xf32> to vector<8x32xf32>
    %152 = arith.addf %150, %151 : vector<8x32xf32>
    %cst_49 = arith.constant dense<0.000000e+00> : vector<8xf32>
    %153 = vector.multi_reduction <add>, %152, %cst_49 [1] : vector<8x32xf32> to vector<8xf32>
    %154 = vector.shape_cast %153 : vector<8xf32> to vector<8x1xf32>
    %cst_50 = arith.constant 3.200000e+01 : f32
    %155 = vector.broadcast %cst_50 : f32 to vector<8x1xf32>
    %156 = arith.divf %154, %155 : vector<8x1xf32>
    %157 = vector.broadcast %156 : vector<8x1xf32> to vector<8x32xf32>
    %158 = arith.subf %152, %157 : vector<8x32xf32>
    %159 = arith.mulf %158, %158 : vector<8x32xf32>
    %cst_51 = arith.constant dense<0.000000e+00> : vector<8xf32>
    %160 = vector.multi_reduction <add>, %159, %cst_51 [1] : vector<8x32xf32> to vector<8xf32>
    %161 = vector.shape_cast %160 : vector<8xf32> to vector<8x1xf32>
    %cst_52 = arith.constant 3.200000e+01 : f32
    %162 = vector.broadcast %cst_52 : f32 to vector<8x1xf32>
    %163 = arith.divf %161, %162 : vector<8x1xf32>
    %164 = vector.broadcast %156 : vector<8x1xf32> to vector<8x32xf32>
    %165 = arith.subf %152, %164 : vector<8x32xf32>
    %cst_53 = arith.constant 9.99999974E-6 : f32
    %166 = vector.broadcast %cst_53 : f32 to vector<8x1xf32>
    %167 = arith.addf %163, %166 : vector<8x1xf32>
    %168 = math.rsqrt %167 : vector<8x1xf32>
    %169 = vector.broadcast %168 : vector<8x1xf32> to vector<8x32xf32>
    %170 = arith.mulf %165, %169 : vector<8x32xf32>
    %171 = vector.broadcast %13 : vector<1x32xf32> to vector<8x32xf32>
    %172 = arith.mulf %170, %171 : vector<8x32xf32>
    %173 = vector.broadcast %14 : vector<1x32xf32> to vector<8x32xf32>
    %174 = arith.addf %172, %173 : vector<8x32xf32>
    %175 = arith.truncf %174 : vector<8x32xf32> to vector<8x32xbf16>
    %cst_54 = arith.constant dense<0.000000e+00> : vector<8x128xf32>
    %176 = tpu.matmul %175, %22, %cst_54 {dimension_numbers = #tpu.dot_dimension_numbers<[1], [0], [0], [1], [0, 0, 1, 1], [], []>} : vector<8x32xbf16>, vector<32x128xbf16>, vector<8x128xf32> -> vector<8x128xf32>
    %c0_55 = arith.constant 0 : index
    %c0_56 = arith.constant 0 : index
    %c0_57 = arith.constant 0 : index
    %177 = vector.load %arg7[%c0_55, %c0_56, %c0_57] : memref<2x1x128xf32, #tpu.memory_space<vmem>>, vector<1x1x128xf32>
    %178 = vector.shape_cast %177 : vector<1x1x128xf32> to vector<1x128xf32>
    %179 = vector.broadcast %178 : vector<1x128xf32> to vector<8x128xf32>
    %180 = arith.addf %176, %179 : vector<8x128xf32>
    %cst_58 = arith.constant 0.000000e+00 : f32
    %181 = vector.broadcast %cst_58 : f32 to vector<8x128xf32>
    %182 = arith.maximumf %180, %181 : vector<8x128xf32>
    %183 = arith.truncf %182 : vector<8x128xf32> to vector<8x128xbf16>
    %cst_59 = arith.constant dense<0.000000e+00> : vector<8x32xf32>
    %184 = tpu.matmul %183, %24, %cst_59 {dimension_numbers = #tpu.dot_dimension_numbers<[1], [0], [0], [1], [0, 0, 1, 1], [], []>} : vector<8x128xbf16>, vector<128x32xbf16>, vector<8x32xf32> -> vector<8x32xf32>
    %185 = vector.broadcast %16 : vector<1x32xf32> to vector<8x32xf32>
    %186 = arith.addf %184, %185 : vector<8x32xf32>
    %187 = arith.addf %152, %186 : vector<8x32xf32>
    %c1 = arith.constant 1 : index
    %c0_60 = arith.constant 0 : index
    %c0_61 = arith.constant 0 : index
    %188 = vector.load %arg9[%c1, %c0_60, %c0_61] : memref<2x6x32xf32, #tpu.memory_space<vmem>>, vector<1x6x32xf32>
    %189 = vector.shape_cast %188 : vector<1x6x32xf32> to vector<6x32xf32>
    %190 = vector.extract_strided_slice %189 {offsets = [0, 0], sizes = [1, 32], strides = [1, 1]} : vector<6x32xf32> to vector<1x32xf32>
    %191 = vector.extract_strided_slice %189 {offsets = [1, 0], sizes = [1, 32], strides = [1, 1]} : vector<6x32xf32> to vector<1x32xf32>
    %192 = vector.extract_strided_slice %189 {offsets = [2, 0], sizes = [1, 32], strides = [1, 1]} : vector<6x32xf32> to vector<1x32xf32>
    %193 = vector.extract_strided_slice %189 {offsets = [3, 0], sizes = [1, 32], strides = [1, 1]} : vector<6x32xf32> to vector<1x32xf32>
    %194 = vector.extract_strided_slice %189 {offsets = [4, 0], sizes = [1, 32], strides = [1, 1]} : vector<6x32xf32> to vector<1x32xf32>
    %195 = vector.extract_strided_slice %189 {offsets = [5, 0], sizes = [1, 32], strides = [1, 1]} : vector<6x32xf32> to vector<1x32xf32>
    %c1_62 = arith.constant 1 : index
    %c0_63 = arith.constant 0 : index
    %c0_64 = arith.constant 0 : index
    %196 = vector.load %arg3[%c1_62, %c0_63, %c0_64] : memref<2x32x96xbf16, #tpu.memory_space<vmem>>, vector<1x32x96xbf16>
    %197 = vector.shape_cast %196 : vector<1x32x96xbf16> to vector<32x96xbf16>
    %c1_65 = arith.constant 1 : index
    %c0_66 = arith.constant 0 : index
    %c0_67 = arith.constant 0 : index
    %198 = vector.load %arg5[%c1_65, %c0_66, %c0_67] : memref<2x32x32xbf16, #tpu.memory_space<vmem>>, vector<1x32x32xbf16>
    %199 = vector.shape_cast %198 : vector<1x32x32xbf16> to vector<32x32xbf16>
    %c1_68 = arith.constant 1 : index
    %c0_69 = arith.constant 0 : index
    %c0_70 = arith.constant 0 : index
    %200 = vector.load %arg6[%c1_68, %c0_69, %c0_70] : memref<2x32x128xbf16, #tpu.memory_space<vmem>>, vector<1x32x128xbf16>
    %201 = vector.shape_cast %200 : vector<1x32x128xbf16> to vector<32x128xbf16>
    %c1_71 = arith.constant 1 : index
    %c0_72 = arith.constant 0 : index
    %c0_73 = arith.constant 0 : index
    %202 = vector.load %arg8[%c1_71, %c0_72, %c0_73] : memref<2x128x32xbf16, #tpu.memory_space<vmem>>, vector<1x128x32xbf16>
    %203 = vector.shape_cast %202 : vector<1x128x32xbf16> to vector<128x32xbf16>
    %cst_74 = arith.constant dense<0.000000e+00> : vector<8xf32>
    %204 = vector.multi_reduction <add>, %187, %cst_74 [1] : vector<8x32xf32> to vector<8xf32>
    %205 = vector.shape_cast %204 : vector<8xf32> to vector<8x1xf32>
    %cst_75 = arith.constant 3.200000e+01 : f32
    %206 = vector.broadcast %cst_75 : f32 to vector<8x1xf32>
    %207 = arith.divf %205, %206 : vector<8x1xf32>
    %208 = vector.broadcast %207 : vector<8x1xf32> to vector<8x32xf32>
    %209 = arith.subf %187, %208 : vector<8x32xf32>
    %210 = arith.mulf %209, %209 : vector<8x32xf32>
    %cst_76 = arith.constant dense<0.000000e+00> : vector<8xf32>
    %211 = vector.multi_reduction <add>, %210, %cst_76 [1] : vector<8x32xf32> to vector<8xf32>
    %212 = vector.shape_cast %211 : vector<8xf32> to vector<8x1xf32>
    %cst_77 = arith.constant 3.200000e+01 : f32
    %213 = vector.broadcast %cst_77 : f32 to vector<8x1xf32>
    %214 = arith.divf %212, %213 : vector<8x1xf32>
    %215 = vector.broadcast %207 : vector<8x1xf32> to vector<8x32xf32>
    %216 = arith.subf %187, %215 : vector<8x32xf32>
    %cst_78 = arith.constant 9.99999974E-6 : f32
    %217 = vector.broadcast %cst_78 : f32 to vector<8x1xf32>
    %218 = arith.addf %214, %217 : vector<8x1xf32>
    %219 = math.rsqrt %218 : vector<8x1xf32>
    %220 = vector.broadcast %219 : vector<8x1xf32> to vector<8x32xf32>
    %221 = arith.mulf %216, %220 : vector<8x32xf32>
    %222 = vector.broadcast %190 : vector<1x32xf32> to vector<8x32xf32>
    %223 = arith.mulf %221, %222 : vector<8x32xf32>
    %224 = vector.broadcast %191 : vector<1x32xf32> to vector<8x32xf32>
    %225 = arith.addf %223, %224 : vector<8x32xf32>
    %226 = arith.truncf %225 : vector<8x32xf32> to vector<8x32xbf16>
    %cst_79 = arith.constant dense<0.000000e+00> : vector<8x96xf32>
    %227 = tpu.matmul %226, %197, %cst_79 {dimension_numbers = #tpu.dot_dimension_numbers<[1], [0], [0], [1], [0, 0, 1, 1], [], []>} : vector<8x32xbf16>, vector<32x96xbf16>, vector<8x96xf32> -> vector<8x96xf32>
    %c1_80 = arith.constant 1 : index
    %c0_81 = arith.constant 0 : index
    %c0_82 = arith.constant 0 : index
    %228 = vector.load %arg4[%c1_80, %c0_81, %c0_82] : memref<2x1x96xf32, #tpu.memory_space<vmem>>, vector<1x1x96xf32>
    %229 = vector.shape_cast %228 : vector<1x1x96xf32> to vector<1x96xf32>
    %230 = vector.broadcast %229 : vector<1x96xf32> to vector<8x96xf32>
    %231 = arith.addf %227, %230 : vector<8x96xf32>
    %cst_83 = arith.constant 0.000000e+00 : f32
    %232 = vector.broadcast %cst_83 : f32 to vector<8x32xf32>
    %233 = vector.extract_strided_slice %231 {offsets = [0, 0], sizes = [8, 8], strides = [1, 1]} : vector<8x96xf32> to vector<8x8xf32>
    %234 = vector.extract_strided_slice %231 {offsets = [0, 32], sizes = [8, 8], strides = [1, 1]} : vector<8x96xf32> to vector<8x8xf32>
    %235 = vector.extract_strided_slice %231 {offsets = [0, 64], sizes = [8, 8], strides = [1, 1]} : vector<8x96xf32> to vector<8x8xf32>
    %236 = arith.truncf %233 : vector<8x8xf32> to vector<8x8xbf16>
    %237 = arith.truncf %234 : vector<8x8xf32> to vector<8x8xbf16>
    "tpu.trace_start"() <{level = 10 : i32, message = "te,se->ts"}> : () -> ()
    %cst_84 = arith.constant dense<0.000000e+00> : vector<8x8xf32>
    %238 = tpu.matmul %236, %237, %cst_84 {dimension_numbers = #tpu.dot_dimension_numbers<[1], [1], [0], [0], [0, 0, 1, 0], [], []>} : vector<8x8xbf16>, vector<8x8xbf16>, vector<8x8xf32> -> vector<8x8xf32>
    "tpu.trace_stop"() : () -> ()
    %239 = arith.addf %238, %8 : vector<8x8xf32>
    %cst_85 = arith.constant dense<0xFF800000> : vector<8xf32>
    %240 = vector.multi_reduction <maximumf>, %239, %cst_85 [1] : vector<8x8xf32> to vector<8xf32>
    %241 = vector.shape_cast %240 : vector<8xf32> to vector<8x1xf32>
    %242 = vector.broadcast %241 : vector<8x1xf32> to vector<8x8xf32>
    %243 = arith.subf %239, %242 : vector<8x8xf32>
    %244 = math.exp %243 : vector<8x8xf32>
    %cst_86 = arith.constant dense<0.000000e+00> : vector<8xf32>
    %245 = vector.multi_reduction <add>, %244, %cst_86 [1] : vector<8x8xf32> to vector<8xf32>
    %246 = vector.shape_cast %245 : vector<8xf32> to vector<8x1xf32>
    %247 = tpu.reciprocal %246 {approx = true} : vector<8x1xf32> -> vector<8x1xf32>
    %248 = vector.broadcast %247 : vector<8x1xf32> to vector<8x8xf32>
    %249 = arith.mulf %244, %248 : vector<8x8xf32>
    %250 = arith.truncf %249 : vector<8x8xf32> to vector<8x8xbf16>
    %251 = arith.truncf %235 : vector<8x8xf32> to vector<8x8xbf16>
    %cst_87 = arith.constant dense<0.000000e+00> : vector<8x8xf32>
    %252 = tpu.matmul %250, %251, %cst_87 {dimension_numbers = #tpu.dot_dimension_numbers<[1], [0], [0], [1], [0, 0, 1, 1], [], []>} : vector<8x8xbf16>, vector<8x8xbf16>, vector<8x8xf32> -> vector<8x8xf32>
    %253 = arith.truncf %252 : vector<8x8xf32> to vector<8x8xbf16>
    %254 = vector.extract_strided_slice %199 {offsets = [0, 0], sizes = [8, 32], strides = [1, 1]} : vector<32x32xbf16> to vector<8x32xbf16>
    %cst_88 = arith.constant dense<0.000000e+00> : vector<8x32xf32>
    %255 = tpu.matmul %253, %254, %cst_88 {dimension_numbers = #tpu.dot_dimension_numbers<[1], [0], [0], [1], [0, 0, 1, 1], [], []>} : vector<8x8xbf16>, vector<8x32xbf16>, vector<8x32xf32> -> vector<8x32xf32>
    %256 = arith.addf %232, %255 : vector<8x32xf32>
    %257 = vector.extract_strided_slice %231 {offsets = [0, 8], sizes = [8, 8], strides = [1, 1]} : vector<8x96xf32> to vector<8x8xf32>
    %258 = vector.extract_strided_slice %231 {offsets = [0, 40], sizes = [8, 8], strides = [1, 1]} : vector<8x96xf32> to vector<8x8xf32>
    %259 = vector.extract_strided_slice %231 {offsets = [0, 72], sizes = [8, 8], strides = [1, 1]} : vector<8x96xf32> to vector<8x8xf32>
    %260 = arith.truncf %257 : vector<8x8xf32> to vector<8x8xbf16>
    %261 = arith.truncf %258 : vector<8x8xf32> to vector<8x8xbf16>
    "tpu.trace_start"() <{level = 10 : i32, message = "te,se->ts"}> : () -> ()
    %cst_89 = arith.constant dense<0.000000e+00> : vector<8x8xf32>
    %262 = tpu.matmul %260, %261, %cst_89 {dimension_numbers = #tpu.dot_dimension_numbers<[1], [1], [0], [0], [0, 0, 1, 0], [], []>} : vector<8x8xbf16>, vector<8x8xbf16>, vector<8x8xf32> -> vector<8x8xf32>
    "tpu.trace_stop"() : () -> ()
    %263 = arith.addf %262, %8 : vector<8x8xf32>
    %cst_90 = arith.constant dense<0xFF800000> : vector<8xf32>
    %264 = vector.multi_reduction <maximumf>, %263, %cst_90 [1] : vector<8x8xf32> to vector<8xf32>
    %265 = vector.shape_cast %264 : vector<8xf32> to vector<8x1xf32>
    %266 = vector.broadcast %265 : vector<8x1xf32> to vector<8x8xf32>
    %267 = arith.subf %263, %266 : vector<8x8xf32>
    %268 = math.exp %267 : vector<8x8xf32>
    %cst_91 = arith.constant dense<0.000000e+00> : vector<8xf32>
    %269 = vector.multi_reduction <add>, %268, %cst_91 [1] : vector<8x8xf32> to vector<8xf32>
    %270 = vector.shape_cast %269 : vector<8xf32> to vector<8x1xf32>
    %271 = tpu.reciprocal %270 {approx = true} : vector<8x1xf32> -> vector<8x1xf32>
    %272 = vector.broadcast %271 : vector<8x1xf32> to vector<8x8xf32>
    %273 = arith.mulf %268, %272 : vector<8x8xf32>
    %274 = arith.truncf %273 : vector<8x8xf32> to vector<8x8xbf16>
    %275 = arith.truncf %259 : vector<8x8xf32> to vector<8x8xbf16>
    %cst_92 = arith.constant dense<0.000000e+00> : vector<8x8xf32>
    %276 = tpu.matmul %274, %275, %cst_92 {dimension_numbers = #tpu.dot_dimension_numbers<[1], [0], [0], [1], [0, 0, 1, 1], [], []>} : vector<8x8xbf16>, vector<8x8xbf16>, vector<8x8xf32> -> vector<8x8xf32>
    %277 = arith.truncf %276 : vector<8x8xf32> to vector<8x8xbf16>
    %278 = vector.extract_strided_slice %199 {offsets = [8, 0], sizes = [8, 32], strides = [1, 1]} : vector<32x32xbf16> to vector<8x32xbf16>
    %cst_93 = arith.constant dense<0.000000e+00> : vector<8x32xf32>
    %279 = tpu.matmul %277, %278, %cst_93 {dimension_numbers = #tpu.dot_dimension_numbers<[1], [0], [0], [1], [0, 0, 1, 1], [], []>} : vector<8x8xbf16>, vector<8x32xbf16>, vector<8x32xf32> -> vector<8x32xf32>
    %280 = arith.addf %256, %279 : vector<8x32xf32>
    %281 = vector.extract_strided_slice %231 {offsets = [0, 16], sizes = [8, 8], strides = [1, 1]} : vector<8x96xf32> to vector<8x8xf32>
    %282 = vector.extract_strided_slice %231 {offsets = [0, 48], sizes = [8, 8], strides = [1, 1]} : vector<8x96xf32> to vector<8x8xf32>
    %283 = vector.extract_strided_slice %231 {offsets = [0, 80], sizes = [8, 8], strides = [1, 1]} : vector<8x96xf32> to vector<8x8xf32>
    %284 = arith.truncf %281 : vector<8x8xf32> to vector<8x8xbf16>
    %285 = arith.truncf %282 : vector<8x8xf32> to vector<8x8xbf16>
    "tpu.trace_start"() <{level = 10 : i32, message = "te,se->ts"}> : () -> ()
    %cst_94 = arith.constant dense<0.000000e+00> : vector<8x8xf32>
    %286 = tpu.matmul %284, %285, %cst_94 {dimension_numbers = #tpu.dot_dimension_numbers<[1], [1], [0], [0], [0, 0, 1, 0], [], []>} : vector<8x8xbf16>, vector<8x8xbf16>, vector<8x8xf32> -> vector<8x8xf32>
    "tpu.trace_stop"() : () -> ()
    %287 = arith.addf %286, %8 : vector<8x8xf32>
    %cst_95 = arith.constant dense<0xFF800000> : vector<8xf32>
    %288 = vector.multi_reduction <maximumf>, %287, %cst_95 [1] : vector<8x8xf32> to vector<8xf32>
    %289 = vector.shape_cast %288 : vector<8xf32> to vector<8x1xf32>
    %290 = vector.broadcast %289 : vector<8x1xf32> to vector<8x8xf32>
    %291 = arith.subf %287, %290 : vector<8x8xf32>
    %292 = math.exp %291 : vector<8x8xf32>
    %cst_96 = arith.constant dense<0.000000e+00> : vector<8xf32>
    %293 = vector.multi_reduction <add>, %292, %cst_96 [1] : vector<8x8xf32> to vector<8xf32>
    %294 = vector.shape_cast %293 : vector<8xf32> to vector<8x1xf32>
    %295 = tpu.reciprocal %294 {approx = true} : vector<8x1xf32> -> vector<8x1xf32>
    %296 = vector.broadcast %295 : vector<8x1xf32> to vector<8x8xf32>
    %297 = arith.mulf %292, %296 : vector<8x8xf32>
    %298 = arith.truncf %297 : vector<8x8xf32> to vector<8x8xbf16>
    %299 = arith.truncf %283 : vector<8x8xf32> to vector<8x8xbf16>
    %cst_97 = arith.constant dense<0.000000e+00> : vector<8x8xf32>
    %300 = tpu.matmul %298, %299, %cst_97 {dimension_numbers = #tpu.dot_dimension_numbers<[1], [0], [0], [1], [0, 0, 1, 1], [], []>} : vector<8x8xbf16>, vector<8x8xbf16>, vector<8x8xf32> -> vector<8x8xf32>
    %301 = arith.truncf %300 : vector<8x8xf32> to vector<8x8xbf16>
    %302 = vector.extract_strided_slice %199 {offsets = [16, 0], sizes = [8, 32], strides = [1, 1]} : vector<32x32xbf16> to vector<8x32xbf16>
    %cst_98 = arith.constant dense<0.000000e+00> : vector<8x32xf32>
    %303 = tpu.matmul %301, %302, %cst_98 {dimension_numbers = #tpu.dot_dimension_numbers<[1], [0], [0], [1], [0, 0, 1, 1], [], []>} : vector<8x8xbf16>, vector<8x32xbf16>, vector<8x32xf32> -> vector<8x32xf32>
    %304 = arith.addf %280, %303 : vector<8x32xf32>
    %305 = vector.extract_strided_slice %231 {offsets = [0, 24], sizes = [8, 8], strides = [1, 1]} : vector<8x96xf32> to vector<8x8xf32>
    %306 = vector.extract_strided_slice %231 {offsets = [0, 56], sizes = [8, 8], strides = [1, 1]} : vector<8x96xf32> to vector<8x8xf32>
    %307 = vector.extract_strided_slice %231 {offsets = [0, 88], sizes = [8, 8], strides = [1, 1]} : vector<8x96xf32> to vector<8x8xf32>
    %308 = arith.truncf %305 : vector<8x8xf32> to vector<8x8xbf16>
    %309 = arith.truncf %306 : vector<8x8xf32> to vector<8x8xbf16>
    "tpu.trace_start"() <{level = 10 : i32, message = "te,se->ts"}> : () -> ()
    %cst_99 = arith.constant dense<0.000000e+00> : vector<8x8xf32>
    %310 = tpu.matmul %308, %309, %cst_99 {dimension_numbers = #tpu.dot_dimension_numbers<[1], [1], [0], [0], [0, 0, 1, 0], [], []>} : vector<8x8xbf16>, vector<8x8xbf16>, vector<8x8xf32> -> vector<8x8xf32>
    "tpu.trace_stop"() : () -> ()
    %311 = arith.addf %310, %8 : vector<8x8xf32>
    %cst_100 = arith.constant dense<0xFF800000> : vector<8xf32>
    %312 = vector.multi_reduction <maximumf>, %311, %cst_100 [1] : vector<8x8xf32> to vector<8xf32>
    %313 = vector.shape_cast %312 : vector<8xf32> to vector<8x1xf32>
    %314 = vector.broadcast %313 : vector<8x1xf32> to vector<8x8xf32>
    %315 = arith.subf %311, %314 : vector<8x8xf32>
    %316 = math.exp %315 : vector<8x8xf32>
    %cst_101 = arith.constant dense<0.000000e+00> : vector<8xf32>
    %317 = vector.multi_reduction <add>, %316, %cst_101 [1] : vector<8x8xf32> to vector<8xf32>
    %318 = vector.shape_cast %317 : vector<8xf32> to vector<8x1xf32>
    %319 = tpu.reciprocal %318 {approx = true} : vector<8x1xf32> -> vector<8x1xf32>
    %320 = vector.broadcast %319 : vector<8x1xf32> to vector<8x8xf32>
    %321 = arith.mulf %316, %320 : vector<8x8xf32>
    %322 = arith.truncf %321 : vector<8x8xf32> to vector<8x8xbf16>
    %323 = arith.truncf %307 : vector<8x8xf32> to vector<8x8xbf16>
    %cst_102 = arith.constant dense<0.000000e+00> : vector<8x8xf32>
    %324 = tpu.matmul %322, %323, %cst_102 {dimension_numbers = #tpu.dot_dimension_numbers<[1], [0], [0], [1], [0, 0, 1, 1], [], []>} : vector<8x8xbf16>, vector<8x8xbf16>, vector<8x8xf32> -> vector<8x8xf32>
    %325 = arith.truncf %324 : vector<8x8xf32> to vector<8x8xbf16>
    %326 = vector.extract_strided_slice %199 {offsets = [24, 0], sizes = [8, 32], strides = [1, 1]} : vector<32x32xbf16> to vector<8x32xbf16>
    %cst_103 = arith.constant dense<0.000000e+00> : vector<8x32xf32>
    %327 = tpu.matmul %325, %326, %cst_103 {dimension_numbers = #tpu.dot_dimension_numbers<[1], [0], [0], [1], [0, 0, 1, 1], [], []>} : vector<8x8xbf16>, vector<8x32xbf16>, vector<8x32xf32> -> vector<8x32xf32>
    %328 = arith.addf %304, %327 : vector<8x32xf32>
    %329 = arith.addf %187, %328 : vector<8x32xf32>
    %330 = vector.broadcast %194 : vector<1x32xf32> to vector<8x32xf32>
    %331 = arith.addf %329, %330 : vector<8x32xf32>
    %cst_104 = arith.constant dense<0.000000e+00> : vector<8xf32>
    %332 = vector.multi_reduction <add>, %331, %cst_104 [1] : vector<8x32xf32> to vector<8xf32>
    %333 = vector.shape_cast %332 : vector<8xf32> to vector<8x1xf32>
    %cst_105 = arith.constant 3.200000e+01 : f32
    %334 = vector.broadcast %cst_105 : f32 to vector<8x1xf32>
    %335 = arith.divf %333, %334 : vector<8x1xf32>
    %336 = vector.broadcast %335 : vector<8x1xf32> to vector<8x32xf32>
    %337 = arith.subf %331, %336 : vector<8x32xf32>
    %338 = arith.mulf %337, %337 : vector<8x32xf32>
    %cst_106 = arith.constant dense<0.000000e+00> : vector<8xf32>
    %339 = vector.multi_reduction <add>, %338, %cst_106 [1] : vector<8x32xf32> to vector<8xf32>
    %340 = vector.shape_cast %339 : vector<8xf32> to vector<8x1xf32>
    %cst_107 = arith.constant 3.200000e+01 : f32
    %341 = vector.broadcast %cst_107 : f32 to vector<8x1xf32>
    %342 = arith.divf %340, %341 : vector<8x1xf32>
    %343 = vector.broadcast %335 : vector<8x1xf32> to vector<8x32xf32>
    %344 = arith.subf %331, %343 : vector<8x32xf32>
    %cst_108 = arith.constant 9.99999974E-6 : f32
    %345 = vector.broadcast %cst_108 : f32 to vector<8x1xf32>
    %346 = arith.addf %342, %345 : vector<8x1xf32>
    %347 = math.rsqrt %346 : vector<8x1xf32>
    %348 = vector.broadcast %347 : vector<8x1xf32> to vector<8x32xf32>
    %349 = arith.mulf %344, %348 : vector<8x32xf32>
    %350 = vector.broadcast %192 : vector<1x32xf32> to vector<8x32xf32>
    %351 = arith.mulf %349, %350 : vector<8x32xf32>
    %352 = vector.broadcast %193 : vector<1x32xf32> to vector<8x32xf32>
    %353 = arith.addf %351, %352 : vector<8x32xf32>
    %354 = arith.truncf %353 : vector<8x32xf32> to vector<8x32xbf16>
    %cst_109 = arith.constant dense<0.000000e+00> : vector<8x128xf32>
    %355 = tpu.matmul %354, %201, %cst_109 {dimension_numbers = #tpu.dot_dimension_numbers<[1], [0], [0], [1], [0, 0, 1, 1], [], []>} : vector<8x32xbf16>, vector<32x128xbf16>, vector<8x128xf32> -> vector<8x128xf32>
    %c1_110 = arith.constant 1 : index
    %c0_111 = arith.constant 0 : index
    %c0_112 = arith.constant 0 : index
    %356 = vector.load %arg7[%c1_110, %c0_111, %c0_112] : memref<2x1x128xf32, #tpu.memory_space<vmem>>, vector<1x1x128xf32>
    %357 = vector.shape_cast %356 : vector<1x1x128xf32> to vector<1x128xf32>
    %358 = vector.broadcast %357 : vector<1x128xf32> to vector<8x128xf32>
    %359 = arith.addf %355, %358 : vector<8x128xf32>
    %cst_113 = arith.constant 0.000000e+00 : f32
    %360 = vector.broadcast %cst_113 : f32 to vector<8x128xf32>
    %361 = arith.maximumf %359, %360 : vector<8x128xf32>
    %362 = arith.truncf %361 : vector<8x128xf32> to vector<8x128xbf16>
    %cst_114 = arith.constant dense<0.000000e+00> : vector<8x32xf32>
    %363 = tpu.matmul %362, %203, %cst_114 {dimension_numbers = #tpu.dot_dimension_numbers<[1], [0], [0], [1], [0, 0, 1, 1], [], []>} : vector<8x128xbf16>, vector<128x32xbf16>, vector<8x32xf32> -> vector<8x32xf32>
    %364 = vector.broadcast %195 : vector<1x32xf32> to vector<8x32xf32>
    %365 = arith.addf %363, %364 : vector<8x32xf32>
    %366 = arith.addf %331, %365 : vector<8x32xf32>
    %c0_115 = arith.constant 0 : index
    %c0_116 = arith.constant 0 : index
    %367 = vector.load %arg10[%c0_115, %c0_116] : memref<2x32xf32, #tpu.memory_space<vmem>>, vector<2x32xf32>
    %368 = vector.extract_strided_slice %367 {offsets = [0, 0], sizes = [1, 32], strides = [1, 1]} : vector<2x32xf32> to vector<1x32xf32>
    %369 = vector.extract_strided_slice %367 {offsets = [1, 0], sizes = [1, 32], strides = [1, 1]} : vector<2x32xf32> to vector<1x32xf32>
    %cst_117 = arith.constant dense<0.000000e+00> : vector<8xf32>
    %370 = vector.multi_reduction <add>, %366, %cst_117 [1] : vector<8x32xf32> to vector<8xf32>
    %371 = vector.shape_cast %370 : vector<8xf32> to vector<8x1xf32>
    %cst_118 = arith.constant 3.200000e+01 : f32
    %372 = vector.broadcast %cst_118 : f32 to vector<8x1xf32>
    %373 = arith.divf %371, %372 : vector<8x1xf32>
    %374 = vector.broadcast %373 : vector<8x1xf32> to vector<8x32xf32>
    %375 = arith.subf %366, %374 : vector<8x32xf32>
    %376 = arith.mulf %375, %375 : vector<8x32xf32>
    %cst_119 = arith.constant dense<0.000000e+00> : vector<8xf32>
    %377 = vector.multi_reduction <add>, %376, %cst_119 [1] : vector<8x32xf32> to vector<8xf32>
    %378 = vector.shape_cast %377 : vector<8xf32> to vector<8x1xf32>
    %cst_120 = arith.constant 3.200000e+01 : f32
    %379 = vector.broadcast %cst_120 : f32 to vector<8x1xf32>
    %380 = arith.divf %378, %379 : vector<8x1xf32>
    %381 = vector.broadcast %373 : vector<8x1xf32> to vector<8x32xf32>
    %382 = arith.subf %366, %381 : vector<8x32xf32>
    %cst_121 = arith.constant 9.99999974E-6 : f32
    %383 = vector.broadcast %cst_121 : f32 to vector<8x1xf32>
    %384 = arith.addf %380, %383 : vector<8x1xf32>
    %385 = math.rsqrt %384 : vector<8x1xf32>
    %386 = vector.broadcast %385 : vector<8x1xf32> to vector<8x32xf32>
    %387 = arith.mulf %382, %386 : vector<8x32xf32>
    %388 = vector.broadcast %368 : vector<1x32xf32> to vector<8x32xf32>
    %389 = arith.mulf %387, %388 : vector<8x32xf32>
    %390 = vector.broadcast %369 : vector<1x32xf32> to vector<8x32xf32>
    %391 = arith.addf %389, %390 : vector<8x32xf32>
    %392 = arith.truncf %391 : vector<8x32xf32> to vector<8x32xbf16>
    %c0_122 = arith.constant 0 : index
    %c0_123 = arith.constant 0 : index
    %393 = vector.load %arg11[%c0_122, %c0_123] : memref<32x128xbf16, #tpu.memory_space<vmem>>, vector<32x128xbf16>
    %cst_124 = arith.constant dense<0.000000e+00> : vector<8x128xf32>
    %394 = tpu.matmul %392, %393, %cst_124 {dimension_numbers = #tpu.dot_dimension_numbers<[1], [0], [0], [1], [0, 0, 1, 1], [], []>} : vector<8x32xbf16>, vector<32x128xbf16>, vector<8x128xf32> -> vector<8x128xf32>
    %c0_125 = arith.constant 0 : index
    %c0_126 = arith.constant 0 : index
    %395 = vector.load %arg12[%c0_125, %c0_126] : memref<1x128xf32, #tpu.memory_space<vmem>>, vector<1x128xf32>
    %396 = vector.broadcast %395 : vector<1x128xf32> to vector<8x128xf32>
    %397 = arith.addf %394, %396 : vector<8x128xf32>
    %c0_127 = arith.constant 0 : index
    %c0_128 = arith.constant 0 : index
    %398 = vector.load %arg13[%c0_127, %c0_128] : memref<8x128xf32, #tpu.memory_space<vmem>>, vector<8x128xf32>
    tpu.vector_store %arg13[%c0_127, %c0_128], %397 {strides = array<i32>} : memref<8x128xf32, #tpu.memory_space<vmem>>, vector<8x128xf32>,
    return
  }
  func.func @transform_0(%arg0: i32) -> (i32, i32) {
    %c0_i32 = arith.constant 0 : i32
    %c0_i32_0 = arith.constant 0 : i32
    return %arg0, %c0_i32 : i32, i32
  }
  func.func @transform_1(%arg0: i32) -> (i32, i32) {
    %c0_i32 = arith.constant 0 : i32
    %c0_i32_0 = arith.constant 0 : i32
    %c0_i32_1 = arith.constant 0 : i32
    return %c0_i32, %c0_i32_0 : i32, i32
  }
  func.func @transform_2(%arg0: i32) -> (i32, i32, i32) {
    %c0_i32 = arith.constant 0 : i32
    %c0_i32_0 = arith.constant 0 : i32
    %c0_i32_1 = arith.constant 0 : i32
    %c0_i32_2 = arith.constant 0 : i32
    return %c0_i32, %c0_i32_0, %c0_i32_1 : i32, i32, i32
  }
  func.func @transform_3(%arg0: i32) -> (i32, i32, i32) {
    %c0_i32 = arith.constant 0 : i32
    %c0_i32_0 = arith.constant 0 : i32
    %c0_i32_1 = arith.constant 0 : i32
    %c0_i32_2 = arith.constant 0 : i32
    return %c0_i32, %c0_i32_0, %c0_i32_1 : i32, i32, i32
  }
  func.func @transform_4(%arg0: i32) -> (i32, i32, i32) {
    %c0_i32 = arith.constant 0 : i32
    %c0_i32_0 = arith.constant 0 : i32
    %c0_i32_1 = arith.constant 0 : i32
    %c0_i32_2 = arith.constant 0 : i32
    return %c0_i32, %c0_i32_0, %c0_i32_1 : i32, i32, i32
  }
  func.func @transform_5(%arg0: i32) -> (i32, i32, i32) {
    %c0_i32 = arith.constant 0 : i32
    %c0_i32_0 = arith.constant 0 : i32
    %c0_i32_1 = arith.constant 0 : i32
    %c0_i32_2 = arith.constant 0 : i32
    return %c0_i32, %c0_i32_0, %c0_i32_1 : i32, i32, i32
  }
  func.func @transform_6(%arg0: i32) -> (i32, i32, i32) {
    %c0_i32 = arith.constant 0 : i32
    %c0_i32_0 = arith.constant 0 : i32
    %c0_i32_1 = arith.constant 0 : i32
    %c0_i32_2 = arith.constant 0 : i32
    return %c0_i32, %c0_i32_0, %c0_i32_1 : i32, i32, i32
  }
  func.func @transform_7(%arg0: i32) -> (i32, i32, i32) {
    %c0_i32 = arith.constant 0 : i32
    %c0_i32_0 = arith.constant 0 : i32
    %c0_i32_1 = arith.constant 0 : i32
    %c0_i32_2 = arith.constant 0 : i32
    return %c0_i32, %c0_i32_0, %c0_i32_1 : i32, i32, i32
  }
  func.func @transform_8(%arg0: i32) -> (i32, i32, i32) {
    %c0_i32 = arith.constant 0 : i32
    %c0_i32_0 = arith.constant 0 : i32
    %c0_i32_1 = arith.constant 0 : i32
    %c0_i32_2 = arith.constant 0 : i32
    return %c0_i32, %c0_i32_0, %c0_i32_1 : i32, i32, i32
  }
  func.func @transform_9(%arg0: i32) -> (i32, i32) {
    %c0_i32 = arith.constant 0 : i32
    %c0_i32_0 = arith.constant 0 : i32
    %c0_i32_1 = arith.constant 0 : i32
    return %c0_i32, %c0_i32_0 : i32, i32
  }
  func.func @transform_10(%arg0: i32) -> (i32, i32) {
    %c0_i32 = arith.constant 0 : i32
    %c0_i32_0 = arith.constant 0 : i32
    %c0_i32_1 = arith.constant 0 : i32
    return %c0_i32, %c0_i32_0 : i32, i32
  }
  func.func @transform_11(%arg0: i32) -> (i32, i32) {
    %c0_i32 = arith.constant 0 : i32
    %c0_i32_0 = arith.constant 0 : i32
    %c0_i32_1 = arith.constant 0 : i32
    return %c0_i32, %c0_i32_0 : i32, i32
  }
  func.func @transform_12(%arg0: i32) -> (i32, i32) {
    %c0_i32 = arith.constant 0 : i32
    %c0_i32_0 = arith.constant 0 : i32
    return %arg0, %c0_i32 : i32, i32
  }
}

</mosaic_0001>

<bundles_post_ra>
// kernel: transformer_forward.1
= control target key start
LH: loop header
LB: loop body
LE: loop exit
PB: predicated region body
PF: predicated region fallthrough
CT: control target
= control target key end

     0   :  { %s3021_s21 = smov 0   ;;  %s3505_s0 = inlined_call_operand.vmem [shape: f32[16,32], index: 0, kind: input, shape index: {}]   ;;  %s3506_s1 = inlined_call_operand.vmem [shape: f32[8,32], index: 1, kind: input, shape index: {}]   ;;  %s3507_s2 = inlined_call_operand.vmem [shape: bf16[2,32,96], index: 2, kind: input, shape index: {}]   ;;  %s3508_s3 = inlined_call_operand.vmem [shape: f32[2,1,96], index: 3, kind: input, shape index: {}]   ;;  %s3509_s4 = inlined_call_operand.vmem [shape: bf16[2,32,32], index: 4, kind: input, shape index: {}]   ;;  %s3510_s5 = inlined_call_operand.vmem [shape: bf16[2,32,128], index: 5, kind: input, shape index: {}]   ;;  %s3511_s6 = inlined_call_operand.vmem [shape: f32[2,1,128], index: 6, kind: input, shape index: {}]   ;;  %s3512_s7 = inlined_call_operand.vmem [shape: bf16[2,128,32], index: 7, kind: input, shape index: {}]   ;;  %s3513_s8 = inlined_call_operand.vmem [shape: f32[2,6,32], index: 8, kind: input, shape index: {}]   ;;  %s3514_s9 = inlined_call_operand.vmem [shape: f32[2,32], index: 9, kind: input, shape index: {}]   ;;  %s3515_s10 = inlined_call_operand.vmem [shape: bf16[32,128], index: 10, kind: input, shape index: {}]   ;;  %s3516_s11 = inlined_call_operand.vmem [shape: f32[1,128], index: 11, kind: input, shape index: {}]   ;;  %s3517_s12 = inlined_call_operand.vmem [shape: f32[16,128], index: 12, kind: output, shape index: {}]  }
   0x1 LB: > { %s2439_s22 = sadd.s32 4294967295, %s2940_s21   ;;  %p2443_p0 = scmp.ge.s32.totalorder %s2940_s21, 1  ;;  %s2940_s21 = sphi %s3021_s21, %s22_s21  }
   0x2   : > { %p361_p1 = scmp.lt.s32.totalorder %s2940_s21, 3 }
   0x4   : > { %p362_p2 = pnand %p2443_p0, %p361_p1 }
   0x5   : > { %p401_p3 = scmp.lt.s32.totalorder (!%p362_p2), %s2439_s22, 1  ;;  %s2944_s19 = smov (!%p362_p2), 120  }
   0x6   : > { %365 = sbr.rel (%p362_p2) target bundleno = 7987 (0x1f33), region = 68  ;;  %s2945_s20 = smov (!%p362_p2), 96  }
   0x7   : > { %s2946_s24 = smov (!%p362_p2), 88   ;;  %s2948_s25 = smov (!%p362_p2), 56  }
   0x8   : > { %s2949_s26 = smov (!%p362_p2), 64   ;;  %s2950_s27 = smov (!%p362_p2), 80  }
   0x9   : > { %s2952_s15 = smov (!%p362_p2), 48   ;;  %s3521_s16 = smov (!%p362_p2), 104  }
   0xa   : > { %s3520_s17 = smov (!%p362_p2), 72   ;;  %s3519_s30 = smov (!%p362_p2), 40  }
   0xb   : > { %s3527_s22 = smov (!%p401_p3, %s2439_s22), 1  ;;  %v411_v0 = vld [vmem:[%s3506_s1] sm:$0xff]  ;;  %vm448_vm0 = vcmask 261120   ;;  %v2866_v9 = vld [vmem:[%s3507_s2 + $0x8] sm:$0xff]   ;;  %v2942_v10 = vmov 0.0   ;;  %vm2943_vm1 = vmmov 0   ;;  %v413_v15 = vlaneseq }
   0xc   : > { %s3518_s23 = sshll.u32 %s3527_s22, 3  ;;  %2620 = vmatprep.subr.bf16.mxu1 %v2942_v10  ;;  %2624 = vmatprep.mubr.msk.bf16.mxu1 %vm2943_vm1, %v2942_v10  ;;  %v2867_v11 = vld [vmem:[%s3507_s2] sm:$0xff]   ;;  %vm540_vm2 = vcmask 64512   ;;  %v2947_v40 = vmov -1e+30   ;;  %vm604_vm4 = vcmask 1043456  }
   0xd   : > { %s404_s28 = scalar_lea.vmem %s3505_s0, %s3518_s23  ;;  %2621 = vmatpush3.bf16.msra.mxu1 %v2866_v9  ;;  %2634 = vmatprep.subr.bf16.mxu0 %v2942_v10  ;;  %v3060_v16 = vshrl.u32 %v413_v15, 7  ;;  %v3068_v18 = vld [vmem:[%s3513_s8] sm:$0x3f]  ;;  %v416_v39 = vand.u32 127, %v413_v15 }
   0xe   : > { %v410_v1 = vld [vmem:[%s404_s28] sm:$0xff]  ;;  %2622 = vmatprep.subr.bf16.mxu1 %v2942_v10  ;;  %2636 = vmatprep.mubr.msk.bf16.mxu0 %vm2943_vm1, %v2942_v10  ;;  %s2951_s28 = smov 112  }
   0xf   : > { %v3040_v2 = vadd.f32 %v411_v0, %v410_v1  ;;  %v3063_v17 = vsub.s32 0, %v3060_v16  ;;  %v3071_v19 = vsub.s32 1, %v3060_v16  ;;  %v2446_v27 = vld [vmem:[%s3508_s3] ss:$0 sm:$0xff]  ;;  %vm417_vm3 = vcmp.le.s32.totalorder %v416_v39, %v3060_v16 }
  0x10   : > { %v3103_v41 = vsel %vm417_vm3, 0.0, %v2947_v40 }
  0x11   : > { %v449_v3 = vsel %vm448_vm0, %v3040_v2, 0.0  ;;  %2623 = vmatpush3.bf16.msra.mxu1 %v2867_v11  ;;  %v466_v20 = vrot.slane %v3068_v18, %v3063_v17  ;;  %v471_v23 = vrot.slane %v3068_v18, %v3071_v19 }
  0x12   : > { %450 = vadd.xlane.f32.xlu0 %v449_v3  ;;  %2628 = vmatprep.subr.bf16.mxu1 %v2942_v10 }
  0x9b   : > { %v451_v4 = vpop.xlane.xlu0 %450 }
  0x9c   : > { %v453_v5 = vmul.f32 0.03125, %v451_v4 }
  0x9e   : > { %v454_v6 = vsub.f32 %v3040_v2, %v453_v5 }
  0xa0   : > { %v455_v7 = vmul.f32 %v454_v6, %v454_v6 }
  0xa2   : > { %v456_v8 = vsel %vm448_vm0, %v455_v7, 0.0 }
  0xa3   : > { %457 = vadd.xlane.f32.xlu0 %v456_v8 }
 0x12c   : > { %v458_v12 = vpop.xlane.xlu0 %457 }
 0x12d   : > { %v459_v13 = vmul.f32 0.03125, %v458_v12 }
 0x12f   : > { %v460_v14 = vadd.f32 1e-05, %v459_v13 }
 0x131   : > { %2892 = vrsqrt.f32 %v460_v14  ;;  %v424_v14 = vld [vmem:[%s3509_s4] sm:$0xf] }
 0x132   : > { %v810_v15 = vsel %vm604_vm4, %v424_v14, 0 }
 0x13e   : > { %v2893_v21 = vpop.eup %2892 }
 0x13f   : > { %v462_v22 = vmul.f32 %v2893_v21, %v454_v6 }
 0x141   : > { %v467_v24 = vmul.f32 %v466_v20, %v462_v22  ;;  %v425_v20 = vld [vmem:[%s3509_s4 + $0x4] sm:$0xf] }
 0x142   : > { %v764_v21 = vsel %vm604_vm4, %v425_v20, 0 }
 0x143   : > { %v472_v25 = vadd.f32 %v471_v23, %v467_v24 }
 0x145   : > { %v473_v26 = vpack.c.bf16 %v472_v25, %v472_v25 }
 0x147   : > { %2625 = vmatmul.mubr.msk.bf16.vlgmr.msra.gmra.mxu1 %vm448_vm0, %v473_v26 }
 0x148   : > { %2630 = vmatprep.mubr.msk.bf16.mxu1 %vm2943_vm1, %v2942_v10 }
 0x207   : > { %v530_v28 = vpop.f32.mrf.mxu1 }
 0x208   : > { %v531_v29 = vadd.f32 %v2446_v27, %v530_v28 }
 0x209   : > { %v2626_v30 = vpop.f32.mrf.mxu1 }
 0x20a   : > { %v3083_v31 = vpack.c.bf16 %v531_v29, %v531_v29 }
 0x20b   : > { %v533_v32 = vpop.f32.mrf.mxu1 }
 0x20c   : > { %649 = vrot.lane.b32.xlu0 %v3083_v31, %s2944_s19  ;;  %538 = vrot.lane.b32.xlu1 %v3083_v31, %s2945_s20 }
 0x20d   : > { %v2627_v33 = vpop.f32.mrf.mxu1 }
 0x210   : > { %651 = vrot.lane.b32.xlu1 %v3083_v31, %s2946_s24 }
 0x27e   : > { %v539_v34 = vpop.permute.xlu1 %538  ;;  %v650_v38 = vpop.permute.xlu0 %649 }
 0x27f   : > { %v545_v35 = vsel %vm540_vm2, %v539_v34, 0 }
 0x280   : > { %2629 = vmatpush3.bf16.xpose.msra.mxu1 %v545_v35 }
 0x281   : > { %2640 = vmatprep.subr.bf16.mxu1 %v2942_v10 }
 0x282   : > { %v652_v36 = vpop.permute.xlu1 %651 }
 0x283   : > { %v657_v37 = vsel %vm540_vm2, %v652_v36, 0 }
 0x287   : > { %2631 = vmatmul.mubr.msk.bf16.vlgmr.msra.gmra.mxu1 %vm540_vm2, %v3083_v31 }
 0x288   : > { %2641 = vmatpush3.bf16.xpose.msra.mxu1 %v657_v37  ;;  %2642 = vmatprep.mubr.msk.bf16.mxu1 %vm2943_vm1, %v2942_v10 }
 0x289   : > { %2652 = vmatprep.subr.bf16.mxu1 %v2942_v10 }
 0x28f   : > { %2643 = vmatmul.mubr.msk.bf16.vlgmr.msra.gmra.mxu1 %vm540_vm2, %v650_v38 }
 0x290   : > { %2654 = vmatprep.mubr.msk.bf16.mxu1 %vm2943_vm1, %v2942_v10  ;;  %2653 = vmatpush3.bf16.msra.mxu1 %v764_v21 }
 0x291   : > { %2664 = vmatprep.subr.bf16.mxu1 %v2942_v10 }
 0x347   : > { %v581_v42 = vpop.f32.mrf.mxu1 }
 0x348   : > { %v582_v43 = vadd.f32 %v581_v42, %v3103_v41 }
 0x349   : > { %v2632_v44 = vpop.f32.mrf.mxu1 }
 0x34a   : > { %v587_v45 = vsel %vm540_vm2, %v582_v43, -inf }
 0x34b   : > { %588 = vmax.xlane.f32.xlu1 %v587_v45  ;;  %v584_v46 = vpop.f32.mrf.mxu1 }
 0x34d   : > { %v2633_v47 = vpop.f32.mrf.mxu1 }
 0x34f   : > { %v693_v48 = vpop.f32.mrf.mxu1 }
 0x350   : > { %v694_v49 = vadd.f32 %v693_v48, %v3103_v41 }
 0x351   : > { %v2644_v50 = vpop.f32.mrf.mxu1 }
 0x352   : > { %v699_v51 = vsel %vm540_vm2, %v694_v49, -inf }
 0x353   : > { %700 = vmax.xlane.f32.xlu0 %v699_v51  ;;  %v696_v52 = vpop.f32.mrf.mxu1 }
 0x355   : > { %v2645_v53 = vpop.f32.mrf.mxu1 }
 0x369   : > { %711 = vrot.lane.b32.xlu0 %v3083_v31, %s2948_s25 }
 0x3d4   : > { %v589_v54 = vpop.xlane.xlu1 %588 }
 0x3d5   : > { %v590_v55 = vsub.f32 %v582_v43, %v589_v54 }
 0x3d7   : > { %v591_v56 = vmul.f32 1.442695, %v590_v55 }
 0x3d9   : > { %2894 = vpow2.f32 %v591_v56 }
 0x3dc   : > { %v701_v57 = vpop.xlane.xlu0 %700 }
 0x3dd   : > { %v702_v58 = vsub.f32 %v694_v49, %v701_v57 }
 0x3df   : > { %v703_v59 = vmul.f32 1.442695, %v702_v58 }
 0x3e0   : > { %v712_v7 = vpop.permute.xlu0 %711 }
 0x3e1   : > { %2896 = vpow2.f32 %v703_v59  ;;  %v717_v9 = vsel %vm604_vm4, %v712_v7, 0 }
 0x3e6   : > { %v2895_v60 = vpop.eup %2894 }
 0x3e7   : > { %v593_v61 = vsel %vm540_vm2, %v2895_v60, 0.0 }
 0x3e8   : > { %594 = vadd.xlane.f32.xlu1 %v593_v61 }
 0x3ee   : > { %v2897_v62 = vpop.eup %2896 }
 0x3ef   : > { %v705_v63 = vsel %vm540_vm2, %v2897_v62, 0.0 }
 0x3f0   : > { %706 = vadd.xlane.f32.xlu1 %v705_v63 }
 0x401   : > { %599 = vrot.lane.b32.xlu1 %v3083_v31, %s2949_s26 }
 0x405   : > { %854 = vrot.lane.b32.xlu1 %v3083_v31, %s2950_s27 }
 0x409   : > { %852 = vrot.lane.b32.xlu1 %v3083_v31, %s2951_s28 }
 0x471   : > { %v595_v0 = vpop.xlane.xlu1 %594 }
 0x472   : > { %2898 = vrcp.f32 %v595_v0 }
 0x479   : > { %v707_v1 = vpop.xlane.xlu1 %706 }
 0x47a   : > { %2900 = vrcp.f32 %v707_v1 }
 0x47d   : > { %v600_v3 = vpop.permute.xlu1 %599 }
 0x47e   : > { %v606_v4 = vsel %vm604_vm4, %v600_v3, 0  ;;  %v426_v3 = vld [vmem:[%s3509_s4 + $0x8] sm:$0xf] }
 0x47f   : > { %v2899_v5 = vpop.eup %2898  ;;  %2635 = vmatpush3.bf16.msra.mxu0 %v606_v4  ;;  %v967_v4 = vsel %vm604_vm4, %v426_v3, 0  ;;  %v2875_v3 = vld [vmem:[%s3512_s7 + $0x10] sm:$0xff]  }
 0x480   : > { %2646 = vmatprep.subr.bf16.mxu0 %v2942_v10  ;;  %v597_v6 = vmul.f32 %v2899_v5, %v2895_v60 }
 0x481   : > { %v855_v27 = vpop.permute.xlu1 %854 }
 0x482   : > { %v598_v8 = vpack.c.bf16 %v597_v6, %v597_v6  ;;  %v860_v32 = vsel %vm540_vm2, %v855_v27, 0 }
 0x484   : > { %2637 = vmatmul.mubr.msk.bf16.vlgmr.msra.gmra.mxu0 %vm540_vm2, %v598_v8 }
 0x485   : > { %2647 = vmatpush3.bf16.msra.mxu0 %v717_v9  ;;  %2648 = vmatprep.mubr.msk.bf16.mxu0 %vm2943_vm1, %v2942_v10  ;;  %v853_v35 = vpop.permute.xlu1 %852 }
 0x486   : > { %2658 = vmatprep.subr.bf16.mxu0 %v2942_v10 }
 0x487   : > { %v2901_v11 = vpop.eup %2900 }
 0x488   : > { %v709_v12 = vmul.f32 %v2901_v11, %v2897_v62 }
 0x48a   : > { %v710_v13 = vpack.c.bf16 %v709_v12, %v709_v12 }
 0x48c   : > { %2649 = vmatmul.mubr.msk.bf16.vlgmr.msra.gmra.mxu0 %vm540_vm2, %v710_v13 }
 0x48d   : > { %2660 = vmatprep.mubr.msk.bf16.mxu0 %vm2943_vm1, %v2942_v10  ;;  %2659 = vmatpush3.bf16.msra.mxu0 %v810_v15 }
 0x48e   : > { %2670 = vmatprep.subr.bf16.mxu0 %v2942_v10 }
 0x544   : > { %v642_v22 = vpop.f32.mrf.mxu0 }
 0x545   : > { %v648_v23 = vpack.c.bf16 %v642_v22, %v642_v22 }
 0x546   : > { %v2638_v24 = vpop.f32.mrf.mxu0 }
 0x547   : > { %2661 = vmatmul.mubr.msk.bf16.vlgmr.msra.gmra.mxu0 %vm540_vm2, %v648_v23 }
 0x548   : > { %v645_v25 = vpop.f32.mrf.mxu0  ;;  %2672 = vmatprep.mubr.msk.bf16.mxu0 %vm2943_vm1, %v2942_v10 }
 0x54a   : > { %v2639_v26 = vpop.f32.mrf.mxu0 }
 0x54c   : > { %v753_v28 = vpop.f32.mrf.mxu0 }
 0x54d   : > { %v759_v29 = vpack.c.bf16 %v753_v28, %v753_v28 }
 0x54e   : > { %v2650_v30 = vpop.f32.mrf.mxu0 }
 0x54f   : > { %2655 = vmatmul.mubr.msk.bf16.vlgmr.msra.gmra.mxu1 %vm540_vm2, %v759_v29  ;;  %v427_v29 = vld [vmem:[%s3509_s4 + $0xc] sm:$0xf] }
 0x550   : > { %2665 = vmatpush3.bf16.xpose.msra.mxu1 %v860_v32  ;;  %v756_v33 = vpop.f32.mrf.mxu0  ;;  %2666 = vmatprep.mubr.msk.bf16.mxu1 %vm2943_vm1, %v2942_v10  ;;  %v1125_v30 = vsel %vm604_vm4, %v427_v29, 0 }
 0x551   : > { %2676 = vmatprep.subr.bf16.mxu1 %v2942_v10 }
 0x552   : > { %v2651_v34 = vpop.f32.mrf.mxu0 }
 0x557   : > { %2667 = vmatmul.mubr.msk.bf16.vlgmr.msra.gmra.mxu1 %vm540_vm2, %v853_v35 }
 0x558   : > { %2678 = vmatprep.mubr.msk.bf16.mxu1 %vm2943_vm1, %v2942_v10  ;;  %2677 = vmatpush3.bf16.msra.mxu1 %v967_v4 }
 0x559   : > { %2688 = vmatprep.subr.bf16.mxu1 %v2942_v10 }
 0x607   : > { %v846_v36 = vpop.f32.mrf.mxu0 }
 0x609   : > { %v2662_v37 = vpop.f32.mrf.mxu0 }
 0x60b   : > { %v849_v38 = vpop.f32.mrf.mxu0 }
 0x60d   : > { %v2663_v39 = vpop.f32.mrf.mxu0 }
 0x60f   : > { %v800_v40 = vpop.f32.mrf.mxu1 }
 0x610   : > { %v3150_v42 = vadd.f32 %v846_v36, %v800_v40 }
 0x611   : > { %v2656_v43 = vpop.f32.mrf.mxu1 }
 0x613   : > { %v803_v44 = vpop.f32.mrf.mxu1 }
 0x615   : > { %v2657_v45 = vpop.f32.mrf.mxu1 }
 0x616   : > { %v1171_v45 = vsub.s32 4, %v3060_v16 }
 0x617   : > { %v896_v46 = vpop.f32.mrf.mxu1 }
 0x618   : > { %v897_v47 = vadd.f32 %v896_v46, %v3103_v41 }
 0x619   : > { %v2668_v48 = vpop.f32.mrf.mxu1 }
 0x61a   : > { %v902_v49 = vsel %vm540_vm2, %v897_v47, -inf  ;;  %v1172_v48 = vrot.slane %v3068_v18, %v1171_v45 }
 0x61b   : > { %903 = vmax.xlane.f32.xlu1 %v902_v49  ;;  %v899_v50 = vpop.f32.mrf.mxu1 }
 0x61d   : > { %v2669_v51 = vpop.f32.mrf.mxu1 }
 0x62c   : > { %914 = vrot.lane.b32.xlu1 %v3083_v31, %s2952_s15 }
 0x630   : > { %1010 = vrot.lane.b32.xlu1 %v3083_v31, %s3521_s16 }
 0x6a4   : > { %v904_v52 = vpop.xlane.xlu1 %903 }
 0x6a5   : > { %v905_v53 = vsub.f32 %v897_v47, %v904_v52 }
 0x6a7   : > { %v906_v54 = vmul.f32 1.442695, %v905_v53 }
 0x6a8   : > { %v915_v55 = vpop.permute.xlu1 %914 }
 0x6a9   : > { %2902 = vpow2.f32 %v906_v54  ;;  %v920_v56 = vsel %vm604_vm4, %v915_v55, 0 }
 0x6aa   : > { %2671 = vmatpush3.bf16.msra.mxu0 %v920_v56 }
 0x6ab   : > { %2682 = vmatprep.subr.bf16.mxu0 %v2942_v10 }
 0x6ac   : > { %v1011_v1 = vpop.permute.xlu1 %1010 }
 0x6b6   : > { %v2903_v57 = vpop.eup %2902 }
 0x6b7   : > { %v908_v58 = vsel %vm540_vm2, %v2903_v57, 0.0 }
 0x6b8   : > { %909 = vadd.xlane.f32.xlu0 %v908_v58 }
 0x6ce   : > { %1012 = vrot.lane.b32.xlu0 %v3083_v31, %s3520_s17  ;;  %s3524_s17 = smov 40  }
 0x741   : > { %v910_v59 = vpop.xlane.xlu0 %909 }
 0x742   : > { %2904 = vrcp.f32 %v910_v59 }
 0x745   : > { %v1013_v62 = vpop.permute.xlu0 %1012 }
 0x746   : > { %v1018_v0 = vsel %vm540_vm2, %v1013_v62, 0  ;;  %v2871_v62 = vld [vmem:[%s3512_s7 + $0x30] sm:$0xff]  }
 0x74f   : > { %v2905_v60 = vpop.eup %2904 }
 0x750   : > { %v912_v61 = vmul.f32 %v2905_v60, %v2903_v57  ;;  %v2869_v60 = vld [vmem:[%s3510_s5] sm:$0xff]  }
 0x752   : > { %v913_v63 = vpack.c.bf16 %v912_v61, %v912_v61  ;;  %v2870_v61 = vld [vmem:[%s3512_s7 + $0x38] sm:$0xff]  }
 0x754   : > { %2673 = vmatmul.mubr.msk.bf16.vlgmr.msra.gmra.mxu0 %vm540_vm2, %v913_v63  ;;  %v2872_v63 = vld [vmem:[%s3512_s7 + $0x28] sm:$0xff]  }
 0x755   : > { %2683 = vmatpush3.bf16.xpose.msra.mxu0 %v1018_v0  ;;  %2684 = vmatprep.mubr.msk.bf16.mxu0 %vm2943_vm1, %v2942_v10  ;;  %v2873_v0 = vld [vmem:[%s3512_s7 + $0x20] sm:$0xff]  }
 0x756   : > { %2694 = vmatprep.subr.bf16.mxu0 %v2942_v10 }
 0x75c   : > { %2685 = vmatmul.mubr.msk.bf16.vlgmr.msra.gmra.mxu0 %vm540_vm2, %v1011_v1  ;;  %v2874_v1 = vld [vmem:[%s3512_s7 + $0x18] sm:$0xff]  }
 0x75d   : > { %2696 = vmatprep.mubr.msk.bf16.mxu0 %vm2943_vm1, %v2942_v10  ;;  %2695 = vmatpush3.bf16.msra.mxu0 %v1125_v30 }
 0x75e   : > { %2708 = vmatprep.subr.bf16.mxu0 %v2942_v10 }
 0x814   : > { %v956_v5 = vpop.f32.mrf.mxu0 }
 0x815   : > { %v962_v6 = vpack.c.bf16 %v956_v5, %v956_v5 }
 0x816   : > { %v2674_v7 = vpop.f32.mrf.mxu0 }
 0x817   : > { %2679 = vmatmul.mubr.msk.bf16.vlgmr.msra.gmra.mxu1 %vm540_vm2, %v962_v6  ;;  %v1189_v7 = vsub.s32 2, %v3060_v16 }
 0x818   : > { %v959_v8 = vpop.f32.mrf.mxu0  ;;  %2690 = vmatprep.mubr.msk.bf16.mxu1 %vm2943_vm1, %v2942_v10 }
 0x819   : > { %v1194_v8 = vsub.s32 3, %v3060_v16 }
 0x81a   : > { %v2675_v9 = vpop.f32.mrf.mxu0 }
 0x81b   : > { %v1190_v9 = vrot.slane %v3068_v18, %v1189_v7 }
 0x81c   : > { %v1054_v11 = vpop.f32.mrf.mxu0 }
 0x81d   : > { %v1055_v12 = vadd.f32 %v1054_v11, %v3103_v41 }
 0x81e   : > { %v2686_v13 = vpop.f32.mrf.mxu0 }
 0x81f   : > { %v1060_v14 = vsel %vm540_vm2, %v1055_v12, -inf  ;;  %v1195_v13 = vrot.slane %v3068_v18, %v1194_v8 }
 0x820   : > { %1061 = vmax.xlane.f32.xlu1 %v1060_v14  ;;  %v1057_v15 = vpop.f32.mrf.mxu0 }
 0x822   : > { %v2687_v20 = vpop.f32.mrf.mxu0 }
 0x8a9   : > { %v1062_v21 = vpop.xlane.xlu1 %1061 }
 0x8aa   : > { %v1063_v22 = vsub.f32 %v1055_v12, %v1062_v21  ;;  %v2876_v21 = vld [vmem:[%s3512_s7 + $0x8] sm:$0xff]  }
 0x8ac   : > { %v1064_v23 = vmul.f32 1.442695, %v1063_v22  ;;  %v2877_v22 = vld [vmem:[%s3512_s7] sm:$0xff]  }
 0x8ae   : > { %2906 = vpow2.f32 %v1064_v23  ;;  %v2462_v23 = vld [vmem:[%s3511_s6] ss:$0 sm:$0xff] }
 0x8bb   : > { %v2907_v24 = vpop.eup %2906 }
 0x8bc   : > { %v1066_v25 = vsel %vm540_vm2, %v2907_v24, 0.0 }
 0x8bd   : > { %1067 = vadd.xlane.f32.xlu0 %v1066_v25 }
 0x8d3   : > { %1072 = vrot.lane.b32.xlu0 %v3083_v31, %s3519_s30  ;;  %s3525_s30 = sshll.u32 %s3527_s22, 3 }
 0x8d4   : > { %s408_s13 = scalar_lea.vmem %s3517_s12, %s3525_s30 }
 0x8d7   : > { %v1003_v26 = vpop.f32.mrf.mxu1 }
 0x8d8   : > { %v1009_v27 = vadd.f32 %v1003_v26, %v3150_v42 }
 0x8d9   : > { %v2680_v28 = vpop.f32.mrf.mxu1 }
 0x8db   : > { %v1006_v32 = vpop.f32.mrf.mxu1 }
 0x8dc   : > { %v1264_v32 = vsub.s32 5, %v3060_v16  ;;  %v2890_v16 = vld [vmem:[%s3515_s10 + $0x8] sm:$0xff]  }
 0x8dd   : > { %v2681_v33 = vpop.f32.mrf.mxu1 }
 0x8de   : > { %v1265_v33 = vrot.slane %v3068_v18, %v1264_v32  ;;  %v2878_v18 = vld [vmem:[%s3507_s2 + $0x18] sm:$0xff]  }
 0x946   : > { %v1068_v34 = vpop.xlane.xlu0 %1067 }
 0x947   : > { %2908 = vrcp.f32 %v1068_v34 }
 0x94a   : > { %v1073_v35 = vpop.permute.xlu0 %1072 }
 0x94b   : > { %v1078_v31 = vsel %vm604_vm4, %v1073_v35, 0 }
 0x94c   : > { %2689 = vmatpush3.bf16.msra.mxu1 %v1078_v31 }
 0x94d   : > { %2700 = vmatprep.subr.bf16.mxu1 %v2942_v10 }
 0x954   : > { %v2909_v36 = vpop.eup %2908 }
 0x955   : > { %v1070_v37 = vmul.f32 %v2909_v36, %v2907_v24 }
 0x957   : > { %v1071_v38 = vpack.c.bf16 %v1070_v37, %v1070_v37 }
 0x959   : > { %2691 = vmatmul.mubr.msk.bf16.vlgmr.msra.gmra.mxu1 %vm540_vm2, %v1071_v38 }
 0x95a   : > { %2704 = vmatprep.mubr.msk.bf16.mxu1 %vm2943_vm1, %v2942_v10 }
 0xa19   : > { %v1114_v39 = vpop.f32.mrf.mxu1 }
 0xa1a   : > { %v1120_v40 = vpack.c.bf16 %v1114_v39, %v1114_v39 }
 0xa1b   : > { %v2692_v42 = vpop.f32.mrf.mxu1 }
 0xa1c   : > { %2697 = vmatmul.mubr.msk.bf16.vlgmr.msra.gmra.mxu0 %vm540_vm2, %v1120_v40 }
 0xa1d   : > { %v1117_v43 = vpop.f32.mrf.mxu1  ;;  %2724 = vmatprep.mubr.msk.bf16.mxu0 %vm2943_vm1, %v2942_v10  ;;  %2709 = vmatpush3.bf16.msra.mxu0 %v2870_v61 }
 0xa1e   : > { %2710 = vmatprep.subr.bf16.mxu0 %v2942_v10 }
 0xa1f   : > { %v2693_v44 = vpop.f32.mrf.mxu1 }
 0xa21   : > { %2711 = vmatpush3.bf16.msra.mxu0 %v2871_v62 }
 0xa22   : > { %2712 = vmatprep.subr.bf16.mxu0 %v2942_v10 }
 0xa25   : > { %2713 = vmatpush3.bf16.msra.mxu0 %v2872_v63 }
 0xa26   : > { %2714 = vmatprep.subr.bf16.mxu0 %v2942_v10 }
 0xa29   : > { %2715 = vmatpush3.bf16.msra.mxu0 %v2873_v0 }
 0xa2a   : > { %2716 = vmatprep.subr.bf16.mxu0 %v2942_v10 }
 0xa2d   : > { %2717 = vmatpush3.bf16.msra.mxu0 %v2874_v1 }
 0xa2e   : > { %2718 = vmatprep.subr.bf16.mxu0 %v2942_v10 }
 0xa31   : > { %2719 = vmatpush3.bf16.msra.mxu0 %v2875_v3 }
 0xa32   : > { %2720 = vmatprep.subr.bf16.mxu0 %v2942_v10 }
 0xa35   : > { %2721 = vmatpush3.bf16.msra.mxu0 %v2876_v21 }
 0xa36   : > { %2722 = vmatprep.subr.bf16.mxu0 %v2942_v10 }
 0xa39   : > { %2723 = vmatpush3.bf16.msra.mxu0 %v2877_v22 }
 0xa3a   : > { %2754 = vmatprep.subr.bf16.mxu0 %v2942_v10 }
 0xadc   : > { %v1161_v46 = vpop.f32.mrf.mxu0 }
 0xadd   : > { %v1167_v47 = vadd.f32 %v1161_v46, %v1009_v27 }
 0xade   : > { %v2698_v49 = vpop.f32.mrf.mxu0 }
 0xadf   : > { %v1168_v50 = vadd.f32 %v1167_v47, %v3040_v2  ;;  %v2868_v2 = vld [vmem:[%s3510_s5 + $0x8] sm:$0xff]   ;;  %v2879_v47 = vld [vmem:[%s3507_s2 + $0x10] sm:$0xff]  }
 0xae0   : > { %v1164_v51 = vpop.f32.mrf.mxu0  ;;  %2701 = vmatpush3.bf16.msra.mxu1 %v2868_v2 }
 0xae1   : > { %v3203_v52 = vadd.f32 %v1172_v48, %v1168_v50  ;;  %2702 = vmatprep.subr.bf16.mxu1 %v2942_v10  ;;  %v3287_v51 = vld [vmem:[%s3513_s8 + $0x8] sm:$0x3f] }
 0xae2   : > { %v2699_v53 = vpop.f32.mrf.mxu0 }
 0xae3   : > { %v1174_v54 = vsel %vm448_vm0, %v3203_v52, 0.0 }
 0xae4   : > { %1175 = vadd.xlane.f32.xlu1 %v1174_v54  ;;  %2703 = vmatpush3.bf16.msra.mxu1 %v2869_v60 }
 0xae5   : > { %2728 = vmatprep.subr.bf16.mxu1 %v2942_v10 }
 0xb6d   : > { %v1176_v55 = vpop.xlane.xlu1 %1175 }
 0xb6e   : > { %v1177_v56 = vmul.f32 0.03125, %v1176_v55  ;;  %v1410_v55 = vrot.slane %v3287_v51, %v3071_v19 }
 0xb70   : > { %v1178_v57 = vsub.f32 %v3203_v52, %v1177_v56 }
 0xb72   : > { %v1179_v58 = vmul.f32 %v1178_v57, %v1178_v57 }
 0xb74   : > { %v1180_v59 = vsel %vm448_vm0, %v1179_v58, 0.0 }
 0xb75   : > { %1181 = vadd.xlane.f32.xlu1 %v1180_v59  ;;  %v2504_v59 = vld [vmem:[%s3508_s3 + $0x1] ss:$0 sm:$0xff] }
 0xbfe   : > { %v1182_v4 = vpop.xlane.xlu1 %1181 }
 0xbff   : > { %v1183_v5 = vmul.f32 0.03125, %v1182_v4 }
 0xc01   : > { %v1184_v6 = vadd.f32 1e-05, %v1183_v5 }
 0xc03   : > { %2910 = vrsqrt.f32 %v1184_v6 }
 0xc10   : > { %v2911_v11 = vpop.eup %2910 }
 0xc11   : > { %v1186_v12 = vmul.f32 %v2911_v11, %v1178_v57 }
 0xc13   : > { %v1191_v14 = vmul.f32 %v1190_v9, %v1186_v12 }
 0xc15   : > { %v1196_v15 = vadd.f32 %v1195_v13, %v1191_v14 }
 0xc17   : > { %v1197_v20 = vpack.c.bf16 %v1196_v15, %v1196_v15 }
 0xc19   : > { %2705 = vmatmul.mubr.msk.bf16.vlgmr.msra.gmra.mxu1 %vm448_vm0, %v1197_v20 }
 0xc1a   : > { %2732 = vmatprep.mubr.msk.bf16.mxu1 %vm2943_vm1, %v2942_v10  ;;  %2729 = vmatpush3.bf16.msra.mxu1 %v2878_v18 }
 0xc1b   : > { %2730 = vmatprep.subr.bf16.mxu1 %v2942_v10 }
 0xc1e   : > { %2731 = vmatpush3.bf16.msra.mxu1 %v2879_v47 }
 0xc1f   : > { %2736 = vmatprep.subr.bf16.mxu1 %v2942_v10 }
 0xcd9   : > { %v1254_v24 = vpop.f32.mrf.mxu1 }
 0xcda   : > { %v1255_v25 = vadd.f32 %v2462_v23, %v1254_v24 }
 0xcdb   : > { %v2706_v26 = vpop.f32.mrf.mxu1 }
 0xcdc   : > { %v1260_v27 = vmax.f32 %v1255_v25, 0.0 }
 0xcdd   : > { %v1257_v28 = vpop.f32.mrf.mxu1 }
 0xcde   : > { %v1261_v29 = vpack.c.bf16 %v1260_v27, %v1260_v27 }
 0xcdf   : > { %v2707_v30 = vpop.f32.mrf.mxu1 }
 0xce0   : > { %2725 = vmatmul.mubr.bf16.vlgmr.msra.gmra.mxu0 %v1261_v29 }
 0xce1   : > { %2756 = vmatprep.mubr.msk.bf16.mxu0 %vm2943_vm1, %v2942_v10 }
 0xda0   : > { %v1348_v34 = vpop.f32.mrf.mxu0 }
 0xda1   : > { %v1349_v35 = vadd.f32 %v1348_v34, %v1265_v33 }
 0xda2   : > { %v2726_v31 = vpop.f32.mrf.mxu0 }
 0xda3   : > { %v3270_v36 = vadd.f32 %v1349_v35, %v3203_v52  ;;  %v1405_v52 = vrot.slane %v3287_v51, %v3063_v17 }
 0xda4   : > { %v1351_v37 = vpop.f32.mrf.mxu0 }
 0xda5   : > { %v1389_v38 = vsel %vm448_vm0, %v3270_v36, 0.0 }
 0xda6   : > { %1390 = vadd.xlane.f32.xlu1 %v1389_v38  ;;  %v2727_v39 = vpop.f32.mrf.mxu0 }
 0xe2f   : > { %v1391_v40 = vpop.xlane.xlu1 %1390 }
 0xe30   : > { %v1392_v42 = vmul.f32 0.03125, %v1391_v40 }
 0xe32   : > { %v1393_v43 = vsub.f32 %v3270_v36, %v1392_v42 }
 0xe34   : > { %v1394_v44 = vmul.f32 %v1393_v43, %v1393_v43 }
 0xe36   : > { %v1395_v46 = vsel %vm448_vm0, %v1394_v44, 0.0 }
 0xe37   : > { %1396 = vadd.xlane.f32.xlu1 %v1395_v46 }
 0xec0   : > { %v1397_v48 = vpop.xlane.xlu1 %1396 }
 0xec1   : > { %v1398_v49 = vmul.f32 0.03125, %v1397_v48 }
 0xec3   : > { %v1399_v50 = vadd.f32 1e-05, %v1398_v49 }
 0xec5   : > { %2912 = vrsqrt.f32 %v1399_v50 }
 0xed2   : > { %v2913_v53 = vpop.eup %2912 }
 0xed3   : > { %v1401_v54 = vmul.f32 %v2913_v53, %v1393_v43 }
 0xed5   : > { %v1406_v56 = vmul.f32 %v1405_v52, %v1401_v54  ;;  %v2480_v52 = vld [vmem:[%s3509_s4 + $0x14] sm:$0xf] }
 0xed6   : > { %v1702_v53 = vsel %vm604_vm4, %v2480_v52, 0 }
 0xed7   : > { %v1411_v57 = vadd.f32 %v1410_v55, %v1406_v56  ;;  %v2479_v56 = vld [vmem:[%s3509_s4 + $0x10] sm:$0xf] }
 0xed9   : > { %v1412_v58 = vpack.c.bf16 %v1411_v57, %v1411_v57 }
 0xedb   : > { %2733 = vmatmul.mubr.msk.bf16.vlgmr.msra.gmra.mxu1 %vm448_vm0, %v1412_v58 }
 0xedc   : > { %2738 = vmatprep.mubr.msk.bf16.mxu1 %vm2943_vm1, %v2942_v10 }
 0xf9b   : > { %v1470_v2 = vpop.f32.mrf.mxu1 }
 0xf9c   : > { %v1471_v60 = vadd.f32 %v2504_v59, %v1470_v2  ;;  %v1748_v59 = vsel %vm604_vm4, %v2479_v56, 0 }
 0xf9d   : > { %v2734_v61 = vpop.f32.mrf.mxu1 }
 0xf9e   : > { %v3299_v62 = vpack.c.bf16 %v1471_v60, %v1471_v60 }
 0xf9f   : > { %v1473_v63 = vpop.f32.mrf.mxu1 }
 0xfa0   : > { %1478 = vrot.lane.b32.xlu1 %v3299_v62, %s2945_s20 }
 0xfa1   : > { %v2735_v0 = vpop.f32.mrf.mxu1 }
0x1012   : > { %v1479_v1 = vpop.permute.xlu1 %1478 }
0x1013   : > { %v1484_v3 = vsel %vm540_vm2, %v1479_v1, 0 }
0x1014   : > { %2737 = vmatpush3.bf16.xpose.msra.mxu1 %v1484_v3 }
0x1015   : > { %2742 = vmatprep.subr.bf16.mxu1 %v2942_v10 }
0x101b   : > { %2739 = vmatmul.mubr.msk.bf16.vlgmr.msra.gmra.mxu1 %vm540_vm2, %v3299_v62 }
0x101c   : > { %2744 = vmatprep.mubr.msk.bf16.mxu1 %vm2943_vm1, %v2942_v10 }
0x10db   : > { %v1520_v4 = vpop.f32.mrf.mxu1 }
0x10dc   : > { %v1521_v5 = vadd.f32 %v1520_v4, %v3103_v41 }
0x10dd   : > { %v2740_v6 = vpop.f32.mrf.mxu1 }
0x10de   : > { %v1526_v9 = vsel %vm540_vm2, %v1521_v5, -inf }
0x10df   : > { %1527 = vmax.xlane.f32.xlu0 %v1526_v9  ;;  %v1523_v11 = vpop.f32.mrf.mxu1 }
0x10e1   : > { %v2741_v12 = vpop.f32.mrf.mxu1 }
0x10f5   : > { %1538 = vrot.lane.b32.xlu0 %v3299_v62, %s2949_s26  ;;  %s3522_s26 = smov 104  }
0x10f9   : > { %1587 = vrot.lane.b32.xlu0 %v3299_v62, %s2944_s19 }
0x1168   : > { %v1528_v13 = vpop.xlane.xlu0 %1527 }
0x1169   : > { %v1529_v14 = vsub.f32 %v1521_v5, %v1528_v13 }
0x116b   : > { %v1530_v15 = vmul.f32 1.442695, %v1529_v14 }
0x116c   : > { %v1539_v20 = vpop.permute.xlu0 %1538 }
0x116d   : > { %2914 = vpow2.f32 %v1530_v15  ;;  %v1544_v21 = vsel %vm604_vm4, %v1539_v20, 0 }
0x116e   : > { %2743 = vmatpush3.bf16.msra.mxu1 %v1544_v21 }
0x116f   : > { %2748 = vmatprep.subr.bf16.mxu1 %v2942_v10 }
0x1170   : > { %v1588_v30 = vpop.permute.xlu0 %1587 }
0x117a   : > { %v2915_v22 = vpop.eup %2914 }
0x117b   : > { %v1532_v23 = vsel %vm540_vm2, %v2915_v22, 0.0 }
0x117c   : > { %1533 = vadd.xlane.f32.xlu1 %v1532_v23 }
0x118d   : > { %1589 = vrot.lane.b32.xlu1 %v3299_v62, %s2946_s24 }
0x1205   : > { %v1534_v24 = vpop.xlane.xlu1 %1533 }
0x1206   : > { %2916 = vrcp.f32 %v1534_v24 }
0x1209   : > { %v1590_v27 = vpop.permute.xlu1 %1589 }
0x120a   : > { %v1595_v29 = vsel %vm540_vm2, %v1590_v27, 0 }
0x1213   : > { %v2917_v25 = vpop.eup %2916 }
0x1214   : > { %v1536_v26 = vmul.f32 %v2917_v25, %v2915_v22 }
0x1216   : > { %v1537_v28 = vpack.c.bf16 %v1536_v26, %v1536_v26 }
0x1218   : > { %2745 = vmatmul.mubr.msk.bf16.vlgmr.msra.gmra.mxu1 %vm540_vm2, %v1537_v28 }
0x1219   : > { %2749 = vmatpush3.bf16.xpose.msra.mxu1 %v1595_v29  ;;  %2750 = vmatprep.mubr.msk.bf16.mxu1 %vm2943_vm1, %v2942_v10 }
0x121a   : > { %2760 = vmatprep.subr.bf16.mxu1 %v2942_v10 }
0x1220   : > { %2751 = vmatmul.mubr.msk.bf16.vlgmr.msra.gmra.mxu1 %vm540_vm2, %v1588_v30 }
0x1221   : > { %2762 = vmatprep.mubr.msk.bf16.mxu1 %vm2943_vm1, %v2942_v10  ;;  %2761 = vmatpush3.bf16.msra.mxu1 %v1702_v53 }
0x1222   : > { %2772 = vmatprep.subr.bf16.mxu1 %v2942_v10 }
0x12d8   : > { %v1580_v33 = vpop.f32.mrf.mxu1 }
0x12d9   : > { %v1586_v2 = vpack.c.bf16 %v1580_v33, %v1580_v33 }
0x12da   : > { %v2746_v34 = vpop.f32.mrf.mxu1 }
0x12dc   : > { %v1583_v35 = vpop.f32.mrf.mxu1 }
0x12de   : > { %v2747_v31 = vpop.f32.mrf.mxu1 }
0x12e0   : > { %v1631_v37 = vpop.f32.mrf.mxu1 }
0x12e1   : > { %v1632_v38 = vadd.f32 %v1631_v37, %v3103_v41 }
0x12e2   : > { %v2752_v39 = vpop.f32.mrf.mxu1 }
0x12e3   : > { %v1637_v40 = vsel %vm540_vm2, %v1632_v38, -inf }
0x12e4   : > { %1638 = vmax.xlane.f32.xlu0 %v1637_v40  ;;  %v1634_v42 = vpop.f32.mrf.mxu1 }
0x12e6   : > { %v2753_v43 = vpop.f32.mrf.mxu1 }
0x12fa   : > { %1649 = vrot.lane.b32.xlu0 %v3299_v62, %s2948_s25 }
0x12fe   : > { %1790 = vrot.lane.b32.xlu0 %v3299_v62, %s2951_s28 }
0x136d   : > { %v1639_v44 = vpop.xlane.xlu0 %1638 }
0x136e   : > { %v1640_v46 = vsub.f32 %v1632_v38, %v1639_v44  ;;  %v2481_v44 = vld [vmem:[%s3509_s4 + $0x18] sm:$0xf] }
0x1370   : > { %v1641_v18 = vmul.f32 1.442695, %v1640_v46  ;;  %v1905_v46 = vsel %vm604_vm4, %v2481_v44, 0  ;;  %v2885_v44 = vld [vmem:[%s3512_s7 + $0x60] sm:$0xff]  }
0x1371   : > { %v1650_v47 = vpop.permute.xlu0 %1649 }
0x1372   : > { %2918 = vpow2.f32 %v1641_v18  ;;  %v1655_v48 = vsel %vm604_vm4, %v1650_v47, 0 }
0x1373   : > { %2755 = vmatpush3.bf16.msra.mxu0 %v1655_v48 }
0x1374   : > { %2766 = vmatprep.subr.bf16.mxu0 %v2942_v10 }
0x1375   : > { %v1791_v6 = vpop.permute.xlu0 %1790 }
0x137f   : > { %v2919_v49 = vpop.eup %2918 }
0x1380   : > { %v1643_v50 = vsel %vm540_vm2, %v2919_v49, 0.0 }
0x1381   : > { %1644 = vadd.xlane.f32.xlu1 %v1643_v50 }
0x1392   : > { %1792 = vrot.lane.b32.xlu1 %v3299_v62, %s2950_s27  ;;  %s3523_s27 = smov 72  }
0x140a   : > { %v1645_v54 = vpop.xlane.xlu1 %1644 }
0x140b   : > { %2920 = vrcp.f32 %v1645_v54 }
0x140e   : > { %v1793_v60 = vpop.permute.xlu1 %1792 }
0x140f   : > { %v1798_v1 = vsel %vm540_vm2, %v1793_v60, 0 }
0x1418   : > { %v2921_v55 = vpop.eup %2920 }
0x1419   : > { %v1647_v57 = vmul.f32 %v2921_v55, %v2919_v49 }
0x141b   : > { %v1648_v58 = vpack.c.bf16 %v1647_v57, %v1647_v57 }
0x141d   : > { %2757 = vmatmul.mubr.msk.bf16.vlgmr.msra.gmra.mxu0 %vm540_vm2, %v1648_v58 }
0x141e   : > { %2767 = vmatpush3.bf16.msra.mxu0 %v1748_v59  ;;  %2768 = vmatprep.mubr.msk.bf16.mxu0 %vm2943_vm1, %v2942_v10 }
0x141f   : > { %2778 = vmatprep.subr.bf16.mxu0 %v2942_v10 }
0x1425   : > { %2769 = vmatmul.mubr.msk.bf16.vlgmr.msra.gmra.mxu0 %vm540_vm2, %v1586_v2 }
0x1426   : > { %2780 = vmatprep.mubr.msk.bf16.mxu0 %vm2943_vm1, %v2942_v10 }
0x14dd   : > { %v1691_v61 = vpop.f32.mrf.mxu0 }
0x14de   : > { %v1697_v63 = vpack.c.bf16 %v1691_v61, %v1691_v61 }
0x14df   : > { %v2758_v0 = vpop.f32.mrf.mxu0 }
0x14e0   : > { %2763 = vmatmul.mubr.msk.bf16.vlgmr.msra.gmra.mxu1 %vm540_vm2, %v1697_v63 }
0x14e1   : > { %2773 = vmatpush3.bf16.xpose.msra.mxu1 %v1798_v1  ;;  %v1694_v3 = vpop.f32.mrf.mxu0  ;;  %2774 = vmatprep.mubr.msk.bf16.mxu1 %vm2943_vm1, %v2942_v10 }
0x14e2   : > { %2784 = vmatprep.subr.bf16.mxu1 %v2942_v10 }
0x14e3   : > { %v2759_v4 = vpop.f32.mrf.mxu0 }
0x14e4   : > { %v2482_v4 = vld [vmem:[%s3509_s4 + $0x1c] sm:$0xf] }
0x14e5   : > { %v3360_v5 = vpop.f32.mrf.mxu0 }
0x14e7   : > { %v2770_v9 = vpop.f32.mrf.mxu0 }
0x14e8   : > { %2775 = vmatmul.mubr.msk.bf16.vlgmr.msra.gmra.mxu1 %vm540_vm2, %v1791_v6  ;;  %v2063_v6 = vsel %vm604_vm4, %v2482_v4, 0 }
0x14e9   : > { %v1787_v11 = vpop.f32.mrf.mxu0  ;;  %2786 = vmatprep.mubr.msk.bf16.mxu1 %vm2943_vm1, %v2942_v10  ;;  %2785 = vmatpush3.bf16.msra.mxu1 %v1905_v46  ;;  %v2886_v46 = vld [vmem:[%s3512_s7 + $0x58] sm:$0xff]  }
0x14ea   : > { %2796 = vmatprep.subr.bf16.mxu1 %v2942_v10 }
0x14eb   : > { %v2771_v12 = vpop.f32.mrf.mxu0 }
0x15a0   : > { %v3365_v13 = vpop.f32.mrf.mxu1 }
0x15a1   : > { %v1785_v0 = vadd.f32 %v3360_v5, %v3365_v13 }
0x15a2   : > { %v2764_v14 = vpop.f32.mrf.mxu1 }
0x15a4   : > { %v1741_v15 = vpop.f32.mrf.mxu1 }
0x15a6   : > { %v2765_v20 = vpop.f32.mrf.mxu1 }
0x15a8   : > { %v1834_v21 = vpop.f32.mrf.mxu1 }
0x15a9   : > { %v1835_v22 = vadd.f32 %v1834_v21, %v3103_v41 }
0x15aa   : > { %v2776_v23 = vpop.f32.mrf.mxu1 }
0x15ab   : > { %v1840_v24 = vsel %vm540_vm2, %v1835_v22, -inf }
0x15ac   : > { %1841 = vmax.xlane.f32.xlu0 %v1840_v24  ;;  %v1837_v25 = vpop.f32.mrf.mxu1 }
0x15ae   : > { %v2777_v26 = vpop.f32.mrf.mxu1 }
0x15af   : > { %v2110_v26 = vrot.slane %v3287_v51, %v1171_v45  ;;  %v2880_v45 = vld [vmem:[%s3510_s5 + $0x18] sm:$0xff]  }
0x15c2   : > { %1852 = vrot.lane.b32.xlu0 %v3299_v62, %s2952_s15 }
0x15c6   : > { %1948 = vrot.lane.b32.xlu0 %v3299_v62, %s3522_s26 }
0x1635   : > { %v1842_v27 = vpop.xlane.xlu0 %1841 }
0x1636   : > { %v1843_v28 = vsub.f32 %v1835_v22, %v1842_v27 }
0x1638   : > { %v1844_v29 = vmul.f32 1.442695, %v1843_v28 }
0x1639   : > { %v1853_v30 = vpop.permute.xlu0 %1852 }
0x163a   : > { %2922 = vpow2.f32 %v1844_v29  ;;  %v1858_v33 = vsel %vm604_vm4, %v1853_v30, 0 }
0x163b   : > { %2779 = vmatpush3.bf16.msra.mxu0 %v1858_v33 }
0x163c   : > { %2790 = vmatprep.subr.bf16.mxu0 %v2942_v10 }
0x163d   : > { %v1949_v43 = vpop.permute.xlu0 %1948 }
0x1647   : > { %v2923_v34 = vpop.eup %2922 }
0x1648   : > { %v1846_v35 = vsel %vm540_vm2, %v2923_v34, 0.0 }
0x1649   : > { %1847 = vadd.xlane.f32.xlu1 %v1846_v35 }
0x165a   : > { %1950 = vrot.lane.b32.xlu1 %v3299_v62, %s3523_s27 }
0x16d2   : > { %v1848_v31 = vpop.xlane.xlu1 %1847 }
0x16d3   : > { %2924 = vrcp.f32 %v1848_v31 }
0x16d6   : > { %v1951_v39 = vpop.permute.xlu1 %1950 }
0x16d7   : > { %v1956_v42 = vsel %vm540_vm2, %v1951_v39, 0 }
0x16e0   : > { %v2925_v37 = vpop.eup %2924 }
0x16e1   : > { %v1850_v38 = vmul.f32 %v2925_v37, %v2923_v34 }
0x16e3   : > { %v1851_v40 = vpack.c.bf16 %v1850_v38, %v1850_v38 }
0x16e5   : > { %2781 = vmatmul.mubr.msk.bf16.vlgmr.msra.gmra.mxu0 %vm540_vm2, %v1851_v40  ;;  %v2882_v40 = vld [vmem:[%s3512_s7 + $0x78] sm:$0xff]  }
0x16e6   : > { %2791 = vmatpush3.bf16.xpose.msra.mxu0 %v1956_v42  ;;  %2792 = vmatprep.mubr.msk.bf16.mxu0 %vm2943_vm1, %v2942_v10  ;;  %v2883_v42 = vld [vmem:[%s3512_s7 + $0x70] sm:$0xff]  }
0x16e7   : > { %2802 = vmatprep.subr.bf16.mxu0 %v2942_v10 }
0x16ed   : > { %2793 = vmatmul.mubr.msk.bf16.vlgmr.msra.gmra.mxu0 %vm540_vm2, %v1949_v43  ;;  %v2884_v43 = vld [vmem:[%s3512_s7 + $0x68] sm:$0xff]  }
0x16ee   : > { %2804 = vmatprep.mubr.msk.bf16.mxu0 %vm2943_vm1, %v2942_v10  ;;  %2803 = vmatpush3.bf16.msra.mxu0 %v2063_v6 }
0x16ef   : > { %2816 = vmatprep.subr.bf16.mxu0 %v2942_v10 }
0x17a5   : > { %v1894_v18 = vpop.f32.mrf.mxu0 }
0x17a6   : > { %v1900_v47 = vpack.c.bf16 %v1894_v18, %v1894_v18  ;;  %v2887_v18 = vld [vmem:[%s3512_s7 + $0x50] sm:$0xff]  }
0x17a7   : > { %v2782_v48 = vpop.f32.mrf.mxu0 }
0x17a8   : > { %2787 = vmatmul.mubr.msk.bf16.vlgmr.msra.gmra.mxu1 %vm540_vm2, %v1900_v47 }
0x17a9   : > { %v1897_v49 = vpop.f32.mrf.mxu0  ;;  %2798 = vmatprep.mubr.msk.bf16.mxu1 %vm2943_vm1, %v2942_v10 }
0x17ab   : > { %v2783_v50 = vpop.f32.mrf.mxu0 }
0x17ac   : > { %v2128_v50 = vrot.slane %v3287_v51, %v1189_v7  ;;  %v2889_v7 = vld [vmem:[%s3512_s7 + $0x40] sm:$0xff]  }
0x17ad   : > { %v1992_v52 = vpop.f32.mrf.mxu0 }
0x17ae   : > { %v1993_v53 = vadd.f32 %v1992_v52, %v3103_v41 }
0x17af   : > { %v2794_v54 = vpop.f32.mrf.mxu0 }
0x17b0   : > { %v1998_v55 = vsel %vm540_vm2, %v1993_v53, -inf  ;;  %v2133_v54 = vrot.slane %v3287_v51, %v1194_v8  ;;  %v2521_v8 = vld [vmem:[%s3511_s6 + $0x1] ss:$0 sm:$0xff] }
0x17b1   : > { %1999 = vmax.xlane.f32.xlu0 %v1998_v55  ;;  %v1995_v56 = vpop.f32.mrf.mxu0 }
0x17b3   : > { %v2795_v57 = vpop.f32.mrf.mxu0 }
0x17c7   : > { %2010 = vrot.lane.b32.xlu0 %v3299_v62, %s3524_s17 }
0x183a   : > { %v2000_v58 = vpop.xlane.xlu0 %1999 }
0x183b   : > { %v2001_v59 = vsub.f32 %v1993_v53, %v2000_v58  ;;  %v2888_v58 = vld [vmem:[%s3512_s7 + $0x48] sm:$0xff]  }
0x183d   : > { %v2002_v2 = vmul.f32 1.442695, %v2001_v59 }
0x183e   : > { %v2011_v60 = vpop.permute.xlu0 %2010 }
0x183f   : > { %2926 = vpow2.f32 %v2002_v2  ;;  %v2016_v61 = vsel %vm604_vm4, %v2011_v60, 0 }
0x1840   : > { %2797 = vmatpush3.bf16.msra.mxu1 %v2016_v61 }
0x1841   : > { %2808 = vmatprep.subr.bf16.mxu1 %v2942_v10 }
0x184c   : > { %v2927_v41 = vpop.eup %2926 }
0x184d   : > { %v2004_v63 = vsel %vm540_vm2, %v2927_v41, 0.0 }
0x184e   : > { %2005 = vadd.xlane.f32.xlu1 %v2004_v63 }
0x1868   : > { %v1941_v1 = vpop.f32.mrf.mxu1 }
0x1869   : > { %v1947_v3 = vadd.f32 %v1941_v1, %v1785_v0  ;;  %v2204_v1 = vrot.slane %v3287_v51, %v1264_v32  ;;  %v2891_v32 = vld [vmem:[%s3515_s10] sm:$0xff]  }
0x186a   : > { %v2788_v62 = vpop.f32.mrf.mxu1 }
0x186c   : > { %v1944_v9 = vpop.f32.mrf.mxu1 }
0x186e   : > { %v2789_v11 = vpop.f32.mrf.mxu1 }
0x18d7   : > { %v2006_v12 = vpop.xlane.xlu1 %2005 }
0x18d8   : > { %2928 = vrcp.f32 %v2006_v12 }
0x18e5   : > { %v2929_v14 = vpop.eup %2928 }
0x18e6   : > { %v2008_v15 = vmul.f32 %v2929_v14, %v2927_v41 }
0x18e8   : > { %v2009_v20 = vpack.c.bf16 %v2008_v15, %v2008_v15 }
0x18ea   : > { %2799 = vmatmul.mubr.msk.bf16.vlgmr.msra.gmra.mxu1 %vm540_vm2, %v2009_v20 }
0x18eb   : > { %2812 = vmatprep.mubr.msk.bf16.mxu1 %vm2943_vm1, %v2942_v10  ;;  %2809 = vmatpush3.bf16.msra.mxu1 %v2880_v45 }
0x18ec   : > { %2810 = vmatprep.subr.bf16.mxu1 %v2942_v10 }
0x19aa   : > { %v2052_v5 = vpop.f32.mrf.mxu1 }
0x19ab   : > { %v2058_v13 = vpack.c.bf16 %v2052_v5, %v2052_v5 }
0x19ac   : > { %v2800_v21 = vpop.f32.mrf.mxu1 }
0x19ad   : > { %2805 = vmatmul.mubr.msk.bf16.vlgmr.msra.gmra.mxu0 %vm540_vm2, %v2058_v13 }
0x19ae   : > { %v2055_v22 = vpop.f32.mrf.mxu1  ;;  %2832 = vmatprep.mubr.msk.bf16.mxu0 %vm2943_vm1, %v2942_v10  ;;  %2817 = vmatpush3.bf16.msra.mxu0 %v2882_v40 }
0x19af   : > { %2818 = vmatprep.subr.bf16.mxu0 %v2942_v10 }
0x19b0   : > { %v2801_v23 = vpop.f32.mrf.mxu1 }
0x19b1   : > { %v2294_v23 = vld [vmem:[%s3514_s9] sm:$0x3] }
0x19b2   : > { %2819 = vmatpush3.bf16.msra.mxu0 %v2883_v42 }
0x19b3   : > { %2820 = vmatprep.subr.bf16.mxu0 %v2942_v10 }
0x19b6   : > { %2821 = vmatpush3.bf16.msra.mxu0 %v2884_v43 }
0x19b7   : > { %2822 = vmatprep.subr.bf16.mxu0 %v2942_v10 }
0x19ba   : > { %2823 = vmatpush3.bf16.msra.mxu0 %v2885_v44 }
0x19bb   : > { %2824 = vmatprep.subr.bf16.mxu0 %v2942_v10 }
0x19be   : > { %2825 = vmatpush3.bf16.msra.mxu0 %v2886_v46 }
0x19bf   : > { %2826 = vmatprep.subr.bf16.mxu0 %v2942_v10 }
0x19c2   : > { %2827 = vmatpush3.bf16.msra.mxu0 %v2887_v18 }
0x19c3   : > { %2828 = vmatprep.subr.bf16.mxu0 %v2942_v10 }
0x19c6   : > { %2829 = vmatpush3.bf16.msra.mxu0 %v2888_v58 }
0x19c7   : > { %2830 = vmatprep.subr.bf16.mxu0 %v2942_v10 }
0x19ca   : > { %2831 = vmatpush3.bf16.msra.mxu0 %v2889_v7 }
0x1a6d   : > { %v2099_v24 = vpop.f32.mrf.mxu0 }
0x1a6e   : > { %v2105_v25 = vadd.f32 %v2099_v24, %v1947_v3  ;;  %v2311_v24 = vrot.slane %v2294_v23, %v3063_v17 }
0x1a6f   : > { %v2806_v27 = vpop.f32.mrf.mxu0 }
0x1a70   : > { %v2106_v28 = vadd.f32 %v2105_v25, %v3270_v36  ;;  %v2881_v36 = vld [vmem:[%s3510_s5 + $0x10] sm:$0xff]   ;;  %v2316_v27 = vrot.slane %v2294_v23, %v3071_v19 }
0x1a71   : > { %v2102_v29 = vpop.f32.mrf.mxu0  ;;  %2811 = vmatpush3.bf16.msra.mxu1 %v2881_v36 }
0x1a72   : > { %v3418_v30 = vadd.f32 %v2110_v26, %v2106_v28  ;;  %2836 = vmatprep.subr.bf16.mxu1 %v2942_v10 }
0x1a73   : > { %v2807_v33 = vpop.f32.mrf.mxu0 }
0x1a74   : > { %v2112_v34 = vsel %vm448_vm0, %v3418_v30, 0.0 }
0x1a75   : > { %2113 = vadd.xlane.f32.xlu1 %v2112_v34 }
0x1afe   : > { %v2114_v35 = vpop.xlane.xlu1 %2113 }
0x1aff   : > { %v2115_v31 = vmul.f32 0.03125, %v2114_v35 }
0x1b01   : > { %v2116_v37 = vsub.f32 %v3418_v30, %v2115_v31 }
0x1b03   : > { %v2117_v38 = vmul.f32 %v2116_v37, %v2116_v37 }
0x1b05   : > { %v2118_v39 = vsel %vm448_vm0, %v2117_v38, 0.0 }
0x1b06   : > { %2119 = vadd.xlane.f32.xlu1 %v2118_v39 }
0x1b8f   : > { %v2120_v47 = vpop.xlane.xlu1 %2119 }
0x1b90   : > { %v2121_v48 = vmul.f32 0.03125, %v2120_v47 }
0x1b92   : > { %v2122_v49 = vadd.f32 1e-05, %v2121_v48 }
0x1b94   : > { %2930 = vrsqrt.f32 %v2122_v49 }
0x1ba1   : > { %v2931_v52 = vpop.eup %2930 }
0x1ba2   : > { %v2124_v53 = vmul.f32 %v2931_v52, %v2116_v37 }
0x1ba4   : > { %v2129_v55 = vmul.f32 %v2128_v50, %v2124_v53 }
0x1ba6   : > { %v2134_v56 = vadd.f32 %v2133_v54, %v2129_v55 }
0x1ba8   : > { %v2135_v57 = vpack.c.bf16 %v2134_v56, %v2134_v56 }
0x1baa   : > { %2813 = vmatmul.mubr.msk.bf16.vlgmr.msra.gmra.mxu1 %vm448_vm0, %v2135_v57 }
0x1bab   : > { %2840 = vmatprep.mubr.msk.bf16.mxu1 %vm2943_vm1, %v2942_v10  ;;  %2837 = vmatpush3.bf16.msra.mxu1 %v2890_v16 }
0x1bac   : > { %2838 = vmatprep.subr.bf16.mxu1 %v2942_v10  ;;  %v2533_v10 = vld [vmem:[%s3516_s11] ss:$0 sm:$0xff] }
0x1baf   : > { %2839 = vmatpush3.bf16.msra.mxu1 %v2891_v32 }
0x1c6a   : > { %v2193_v59 = vpop.f32.mrf.mxu1 }
0x1c6b   : > { %v2194_v2 = vadd.f32 %v2521_v8, %v2193_v59 }
0x1c6c   : > { %v2814_v60 = vpop.f32.mrf.mxu1 }
0x1c6d   : > { %v2199_v61 = vmax.f32 %v2194_v2, 0.0 }
0x1c6e   : > { %v2196_v41 = vpop.f32.mrf.mxu1 }
0x1c6f   : > { %v2200_v63 = vpack.c.bf16 %v2199_v61, %v2199_v61 }
0x1c70   : > { %v2815_v0 = vpop.f32.mrf.mxu1 }
0x1c71   : > { %2833 = vmatmul.mubr.bf16.vlgmr.msra.gmra.mxu0 %v2200_v63 }
0x1d31   : > { %v2287_v3 = vpop.f32.mrf.mxu0 }
0x1d32   : > { %v2288_v62 = vadd.f32 %v2287_v3, %v2204_v1 }
0x1d33   : > { %v2834_v4 = vpop.f32.mrf.mxu0 }
0x1d34   : > { %v2293_v6 = vadd.f32 %v2288_v62, %v3418_v30 }
0x1d35   : > { %v2290_v9 = vpop.f32.mrf.mxu0 }
0x1d36   : > { %v2295_v11 = vsel %vm448_vm0, %v2293_v6, 0.0 }
0x1d37   : > { %2296 = vadd.xlane.f32.xlu1 %v2295_v11  ;;  %v2835_v12 = vpop.f32.mrf.mxu0 }
0x1dc0   : > { %v2297_v14 = vpop.xlane.xlu1 %2296 }
0x1dc1   : > { %v2298_v15 = vmul.f32 0.03125, %v2297_v14 }
0x1dc3   : > { %v2299_v20 = vsub.f32 %v2293_v6, %v2298_v15 }
0x1dc5   : > { %v2300_v5 = vmul.f32 %v2299_v20, %v2299_v20 }
0x1dc7   : > { %v2301_v13 = vsel %vm448_vm0, %v2300_v5, 0.0 }
0x1dc8   : > { %2302 = vadd.xlane.f32.xlu1 %v2301_v13 }
0x1e51   : > { %v2303_v51 = vpop.xlane.xlu1 %2302 }
0x1e52   : > { %v2304_v21 = vmul.f32 0.03125, %v2303_v51 }
0x1e54   : > { %v2305_v22 = vadd.f32 1e-05, %v2304_v21 }
0x1e56   : > { %2932 = vrsqrt.f32 %v2305_v22 }
0x1e63   : > { %v2933_v25 = vpop.eup %2932 }
0x1e64   : > { %v2307_v26 = vmul.f32 %v2933_v25, %v2299_v20 }
0x1e66   : > { %v2312_v28 = vmul.f32 %v2311_v24, %v2307_v26 }
0x1e68   : > { %v2317_v29 = vadd.f32 %v2316_v27, %v2312_v28 }
0x1e6a   : > { %v2318_v30 = vpack.c.bf16 %v2317_v29, %v2317_v29 }
0x1e6c   : > { %2841 = vmatmul.mubr.msk.bf16.vlgmr.msra.gmra.mxu1 %vm448_vm0, %v2318_v30 }
0x1f2c   : > { %v2379_v33 = vpop.f32.mrf.mxu1 }
0x1f2d   : > { %v2380_v17 = vadd.f32 %v2533_v10, %v2379_v33 }
0x1f2e   : > { %v2842_v34 = vpop.f32.mrf.mxu1 }
0x1f2f   : > { %2385 = vst [vmem:[%s408_s13] sm:$0xff] %v2380_v17 }
0x1f30   : > { %v2382_v35 = vpop.f32.mrf.mxu1 }
0x1f32   : > { %v2843_v19 = vpop.f32.mrf.mxu1 }
0x1f33 PF: > { %s22_s21 = sadd.s32 1, %s2940_s21  }
0x1f34   : > { %p19_p4 = scmp.ge.s32.totalorder %s22_s21, 4  }
0x1f36   :  { %21 = sbr.rel (!%p19_p4) target bundleno = 1 (0x1), region = 105 }

</bundles_post_ra>
